<compile_context>
chip_gen: v7x
topology: tpu7x:2x2x1
jax: 0.10.0
libtpu: 0.0.40
codegen_flags: <defaults>
</compile_context>

<pallas_src>
import jax
import jax.numpy as jnp
from jax.experimental import pallas as pl
from jax.experimental.pallas import tpu as pltpu


# ---------------------------------------------------------------------------
# Kernel: one batch tile through the whole 4-layer MLP.
# bf16 MXU matmuls with f32 accumulation; bias-add + ReLU kept in f32
# (v5e's VPU has no bf16 VALU, and f32 elementwise is fine everywhere).
# ---------------------------------------------------------------------------
def autoencoder_kernel(x_ref, w1_ref, b1_ref, w2_ref, b2_ref,
                       w3_ref, b3_ref, w4_ref, b4_ref, o_ref):
    h = jnp.dot(x_ref[...].astype(jnp.bfloat16), w1_ref[...],
                preferred_element_type=jnp.float32)
    h = jnp.maximum(h + b1_ref[...], 0.0)

    h = jnp.dot(h.astype(jnp.bfloat16), w2_ref[...],
                preferred_element_type=jnp.float32)
    h = jnp.maximum(h + b2_ref[...], 0.0)

    h = jnp.dot(h.astype(jnp.bfloat16), w3_ref[...],
                preferred_element_type=jnp.float32)
    h = jnp.maximum(h + b3_ref[...], 0.0)

    h = jnp.dot(h.astype(jnp.bfloat16), w4_ref[...],
                preferred_element_type=jnp.float32)
    o_ref[...] = jnp.maximum(h + b4_ref[...], 0.0).astype(o_ref.dtype)


def _auto_tile_b(B):
    """Per-generation M-tile choice.
       v5e: 128 (4x128x128 MXU, single TC).
       v6e: 256 when B >= 256 (single TC, 2x256x256 MXU -> amortize weight fill).
       v7x / unknown: keep >= 2 'parallel' grid steps so both TensorCores work."""
    try:
        kind = jax.devices()[0].device_kind.lower()
    except Exception:
        kind = ""
    if "v5" in kind:
        return 128
    if "v6" in kind:
        return 256 if B >= 256 else 128
    return 256 if B >= 512 else 128


def prepare_params(params, in_features):
    """One-time, out-of-hot-path parameter prep: cast weights to bf16 and pad
    the in_features dim up to a lane-dense multiple of 128 (zero-padded so the
    padded columns cannot contaminate real outputs).  Biases stay f32."""
    Fp = pl.cdiv(in_features, 128) * 128
    w1 = params["w1"].astype(jnp.bfloat16)
    w2 = params["w2"].astype(jnp.bfloat16)
    w3 = params["w3"].astype(jnp.bfloat16)
    w4 = params["w4"].astype(jnp.bfloat16)
    b1, b2, b3, b4 = params["b1"], params["b2"], params["b3"], params["b4"]
    if Fp != in_features:
        pad = Fp - in_features
        w1 = jnp.pad(w1, ((0, pad), (0, 0)))   # extra input rows (x pad cols are 0)
        w4 = jnp.pad(w4, ((0, 0), (0, pad)))   # extra output cols
        b4 = jnp.pad(b4, ((0, 0), (0, pad)))   # padded bias = 0
    prepped = dict(w1=w1, b1=b1, w2=w2, b2=b2, w3=w3, b3=b3, w4=w4, b4=b4)
    return prepped, Fp


def autoencoder_forward(x, prepped, Fp, *, tile_b=None, out_dtype=jnp.float32):
    """x: [B, in_features] float32.  prepped/Fp: from prepare_params (called
    once, outside this function).  Returns [B, in_features] in out_dtype
    (f32 default; bf16 halves the output writeback when acceptable)."""
    B, F = x.shape
    if Fp != F:
        # Only when in_features isn't a multiple of 128: one pad pass so the
        # padded x columns are exact zeros meeting the zero rows of w1.
        x = jnp.pad(x, ((0, 0), (0, Fp - F)))

    if tile_b is None:
        tile_b = _auto_tile_b(B)
    tile_b = max(8, min(tile_b, pl.cdiv(B, 8) * 8))      # no pointless oversize tile
    grid = (pl.cdiv(B, tile_b),)  # ragged last tile: OOB rows dropped by Pallas

    w1, b1 = prepped["w1"], prepped["b1"]
    w2, b2 = prepped["w2"], prepped["b2"]
    w3, b3 = prepped["w3"], prepped["b3"]
    w4, b4 = prepped["w4"], prepped["b4"]

    def rep(a):
        # weight / bias block replicated (constant block index) across the grid
        return pl.BlockSpec(a.shape, lambda i, _nd=a.ndim: (0,) * _nd)

    # Advisory cost estimate so XLA schedules surrounding ops sensibly.
    param_bytes = sum(int(prepped[k].size) * prepped[k].dtype.itemsize
                      for k in prepped)
    flops = 2 * B * (Fp * 256 + 256 * 128 + 128 * 256 + 256 * Fp)
    bytes_accessed = (int(x.size) * x.dtype.itemsize
                      + B * Fp * jnp.dtype(out_dtype).itemsize
                      + param_bytes)
    cost = pl.CostEstimate(flops=flops, transcendentals=0,
                           bytes_accessed=bytes_accessed)

    # Rough VMEM need (params are double-buffered by default + x/out tiles).
    vmem_need = (2 * param_bytes
                 + 2 * tile_b * Fp * (x.dtype.itemsize
                                      + jnp.dtype(out_dtype).itemsize)
                 + 4 * tile_b * max(Fp, 256) * 4)
    cp_kwargs = dict(dimension_semantics=("parallel",))
    if vmem_need > (32 << 20):
        # Only kicks in for very large in_features (matters first on v7x 64 MiB).
        cp_kwargs["vmem_limit_bytes"] = min(int(vmem_need * 1.25), 100 << 20)

    out = pl.pallas_call(
        autoencoder_kernel,
        out_shape=jax.ShapeDtypeStruct((B, Fp), out_dtype),
        grid_spec=pltpu.PrefetchScalarGridSpec(
            num_scalar_prefetch=0,
            grid=grid,
            in_specs=[
                pl.BlockSpec((tile_b, Fp), lambda i: (i, 0)),   # x tile (f32)
                rep(w1), rep(b1),
                rep(w2), rep(b2),
                rep(w3), rep(b3),
                rep(w4), rep(b4),
            ],
            out_specs=pl.BlockSpec((tile_b, Fp), lambda i: (i, 0)),
        ),
        compiler_params=pltpu.CompilerParams(**cp_kwargs),
        cost_estimate=cost,
    )(x, w1, b1, w2, b2, w3, b3, w4, b4)

    return out if Fp == F else out[:, :F]


def init_params(key, in_features):
    """Deterministic init matching PyTorch nn.Linear default
    (U[-1/sqrt(fan_in), +1/sqrt(fan_in)]), weights stored [in, out], f32."""
    dims = [(in_features, 256), (256, 128), (128, 256), (256, in_features)]
    params = {}
    for idx, (fan_in, fan_out) in enumerate(dims, start=1):
        key, kw, kb = jax.random.split(key, 3)
        bound = 1.0 / (fan_in ** 0.5)
        params[f"w{idx}"] = jax.random.uniform(
            kw, (fan_in, fan_out), jnp.float32, -bound, bound)
        params[f"b{idx}"] = jax.random.uniform(
            kb, (1, fan_out), jnp.float32, -bound, bound)
    return params


def reference_forward(x, params):
    """Pure-JAX reference with identical numerics (bf16 matmul inputs,
    f32 accumulation, f32 bias + ReLU)."""
    h = x.astype(jnp.bfloat16)
    for i in range(1, 5):
        acc = jnp.dot(h, params[f"w{i}"].astype(jnp.bfloat16),
                      preferred_element_type=jnp.float32)
        hf = jnp.maximum(acc + params[f"b{i}"], 0.0)
        h = hf.astype(jnp.bfloat16) if i < 4 else hf
    return h


if __name__ == "__main__":
    key = jax.random.PRNGKey(0)
    in_features = 128
    batch = 256            # at tile_b=128 -> 2 "parallel" grid steps (v7x: both cores)

    kp, kx = jax.random.split(key)
    params = init_params(kp, in_features)
    x = jax.random.normal(kx, (batch, in_features), jnp.float32)

    # One-time parameter prep (bf16 cast + lane-dense padding) outside the hot path.
    prepped, Fp = prepare_params(params, in_features)
    prepped = jax.block_until_ready(prepped)

    out = autoencoder_forward(x, prepped, Fp)     # default f32 output (module semantics)
    out = jax.block_until_ready(out)

    ref = reference_forward(x, params)
    assert out.shape == (batch, in_features)
    assert out.dtype == jnp.float32
    # bf16 matmul inputs -> loosened tolerance vs a pure-f32 PyTorch forward
    assert jnp.allclose(out, ref, atol=1e-2, rtol=2e-2), "mismatch vs reference"

    print("KERNEL_OK")
</pallas_src>

<mosaic_0001>
module attributes {stable_mosaic.version = 11 : i64} {
  func.func @autoencoder_kernel(%arg0: i32, %arg1: memref<128x128xf32, #tpu.memory_space<vmem>>, %arg2: memref<128x256xbf16, #tpu.memory_space<vmem>>, %arg3: memref<1x256xf32, #tpu.memory_space<vmem>>, %arg4: memref<256x128xbf16, #tpu.memory_space<vmem>>, %arg5: memref<1x128xf32, #tpu.memory_space<vmem>>, %arg6: memref<128x256xbf16, #tpu.memory_space<vmem>>, %arg7: memref<1x256xf32, #tpu.memory_space<vmem>>, %arg8: memref<256x128xbf16, #tpu.memory_space<vmem>>, %arg9: memref<1x128xf32, #tpu.memory_space<vmem>>, %arg10: memref<128x128xf32, #tpu.memory_space<vmem>>) attributes {dimension_semantics = [#tpu.dimension_semantics<parallel>], iteration_bounds = array<i64: 2>, scalar_prefetch = 0 : i64, scratch_operands = 0 : i64, tpu.core_type = #tpu.core_type<tc>, window_params = [{transform_indices = @transform_0, window_bounds = array<i64: 128, 128>}, {pipeline_mode = #tpu.pipeline_mode<synchronous>, transform_indices = @transform_1, window_bounds = array<i64: 128, 256>}, {pipeline_mode = #tpu.pipeline_mode<synchronous>, transform_indices = @transform_2, window_bounds = array<i64: 1, 256>}, {pipeline_mode = #tpu.pipeline_mode<synchronous>, transform_indices = @transform_3, window_bounds = array<i64: 256, 128>}, {pipeline_mode = #tpu.pipeline_mode<synchronous>, transform_indices = @transform_4, window_bounds = array<i64: 1, 128>}, {pipeline_mode = #tpu.pipeline_mode<synchronous>, transform_indices = @transform_5, window_bounds = array<i64: 128, 256>}, {pipeline_mode = #tpu.pipeline_mode<synchronous>, transform_indices = @transform_6, window_bounds = array<i64: 1, 256>}, {pipeline_mode = #tpu.pipeline_mode<synchronous>, transform_indices = @transform_7, window_bounds = array<i64: 256, 128>}, {pipeline_mode = #tpu.pipeline_mode<synchronous>, transform_indices = @transform_8, window_bounds = array<i64: 1, 128>}, {transform_indices = @transform_9, window_bounds = array<i64: 128, 128>}]} {
    %c0 = arith.constant 0 : index
    %c0_0 = arith.constant 0 : index
    %0 = vector.load %arg1[%c0, %c0_0] : memref<128x128xf32, #tpu.memory_space<vmem>>, vector<128x128xf32>
    %1 = arith.truncf %0 : vector<128x128xf32> to vector<128x128xbf16>
    %c0_1 = arith.constant 0 : index
    %c0_2 = arith.constant 0 : index
    %2 = vector.load %arg2[%c0_1, %c0_2] : memref<128x256xbf16, #tpu.memory_space<vmem>>, vector<128x256xbf16>
    %cst = arith.constant dense<0.000000e+00> : vector<128x256xf32>
    %3 = tpu.matmul %1, %2, %cst {dimension_numbers = #tpu.dot_dimension_numbers<[1], [0], [0], [1], [0, 0, 1, 1], [], []>} : vector<128x128xbf16>, vector<128x256xbf16>, vector<128x256xf32> -> vector<128x256xf32>
    %c0_3 = arith.constant 0 : index
    %c0_4 = arith.constant 0 : index
    %4 = vector.load %arg3[%c0_3, %c0_4] : memref<1x256xf32, #tpu.memory_space<vmem>>, vector<1x256xf32>
    %5 = vector.broadcast %4 : vector<1x256xf32> to vector<128x256xf32>
    %6 = arith.addf %3, %5 : vector<128x256xf32>
    %cst_5 = arith.constant 0.000000e+00 : f32
    %7 = vector.broadcast %cst_5 : f32 to vector<128x256xf32>
    %8 = arith.maximumf %6, %7 : vector<128x256xf32>
    %9 = arith.truncf %8 : vector<128x256xf32> to vector<128x256xbf16>
    %c0_6 = arith.constant 0 : index
    %c0_7 = arith.constant 0 : index
    %10 = vector.load %arg4[%c0_6, %c0_7] : memref<256x128xbf16, #tpu.memory_space<vmem>>, vector<256x128xbf16>
    %cst_8 = arith.constant dense<0.000000e+00> : vector<128x128xf32>
    %11 = tpu.matmul %9, %10, %cst_8 {dimension_numbers = #tpu.dot_dimension_numbers<[1], [0], [0], [1], [0, 0, 1, 1], [], []>} : vector<128x256xbf16>, vector<256x128xbf16>, vector<128x128xf32> -> vector<128x128xf32>
    %c0_9 = arith.constant 0 : index
    %c0_10 = arith.constant 0 : index
    %12 = vector.load %arg5[%c0_9, %c0_10] : memref<1x128xf32, #tpu.memory_space<vmem>>, vector<1x128xf32>
    %13 = vector.broadcast %12 : vector<1x128xf32> to vector<128x128xf32>
    %14 = arith.addf %11, %13 : vector<128x128xf32>
    %cst_11 = arith.constant 0.000000e+00 : f32
    %15 = vector.broadcast %cst_11 : f32 to vector<128x128xf32>
    %16 = arith.maximumf %14, %15 : vector<128x128xf32>
    %17 = arith.truncf %16 : vector<128x128xf32> to vector<128x128xbf16>
    %c0_12 = arith.constant 0 : index
    %c0_13 = arith.constant 0 : index
    %18 = vector.load %arg6[%c0_12, %c0_13] : memref<128x256xbf16, #tpu.memory_space<vmem>>, vector<128x256xbf16>
    %cst_14 = arith.constant dense<0.000000e+00> : vector<128x256xf32>
    %19 = tpu.matmul %17, %18, %cst_14 {dimension_numbers = #tpu.dot_dimension_numbers<[1], [0], [0], [1], [0, 0, 1, 1], [], []>} : vector<128x128xbf16>, vector<128x256xbf16>, vector<128x256xf32> -> vector<128x256xf32>
    %c0_15 = arith.constant 0 : index
    %c0_16 = arith.constant 0 : index
    %20 = vector.load %arg7[%c0_15, %c0_16] : memref<1x256xf32, #tpu.memory_space<vmem>>, vector<1x256xf32>
    %21 = vector.broadcast %20 : vector<1x256xf32> to vector<128x256xf32>
    %22 = arith.addf %19, %21 : vector<128x256xf32>
    %cst_17 = arith.constant 0.000000e+00 : f32
    %23 = vector.broadcast %cst_17 : f32 to vector<128x256xf32>
    %24 = arith.maximumf %22, %23 : vector<128x256xf32>
    %25 = arith.truncf %24 : vector<128x256xf32> to vector<128x256xbf16>
    %c0_18 = arith.constant 0 : index
    %c0_19 = arith.constant 0 : index
    %26 = vector.load %arg8[%c0_18, %c0_19] : memref<256x128xbf16, #tpu.memory_space<vmem>>, vector<256x128xbf16>
    %cst_20 = arith.constant dense<0.000000e+00> : vector<128x128xf32>
    %27 = tpu.matmul %25, %26, %cst_20 {dimension_numbers = #tpu.dot_dimension_numbers<[1], [0], [0], [1], [0, 0, 1, 1], [], []>} : vector<128x256xbf16>, vector<256x128xbf16>, vector<128x128xf32> -> vector<128x128xf32>
    %c0_21 = arith.constant 0 : index
    %c0_22 = arith.constant 0 : index
    %28 = vector.load %arg9[%c0_21, %c0_22] : memref<1x128xf32, #tpu.memory_space<vmem>>, vector<1x128xf32>
    %29 = vector.broadcast %28 : vector<1x128xf32> to vector<128x128xf32>
    %30 = arith.addf %27, %29 : vector<128x128xf32>
    %cst_23 = arith.constant 0.000000e+00 : f32
    %31 = vector.broadcast %cst_23 : f32 to vector<128x128xf32>
    %32 = arith.maximumf %30, %31 : vector<128x128xf32>
    %c0_24 = arith.constant 0 : index
    %c0_25 = arith.constant 0 : index
    %33 = vector.load %arg10[%c0_24, %c0_25] : memref<128x128xf32, #tpu.memory_space<vmem>>, vector<128x128xf32>
    tpu.vector_store %arg10[%c0_24, %c0_25], %32 {strides = array<i32>} : memref<128x128xf32, #tpu.memory_space<vmem>>, vector<128x128xf32>,
    return
  }
  func.func @transform_0(%arg0: i32) -> (i32, i32) {
    %c0_i32 = arith.constant 0 : i32
    %c0_i32_0 = arith.constant 0 : i32
    return %arg0, %c0_i32 : i32, i32
  }
  func.func @transform_1(%arg0: i32) -> (i32, i32) {
    %c0_i32 = arith.constant 0 : i32
    %c0_i32_0 = arith.constant 0 : i32
    %c0_i32_1 = arith.constant 0 : i32
    return %c0_i32, %c0_i32_0 : i32, i32
  }
  func.func @transform_2(%arg0: i32) -> (i32, i32) {
    %c0_i32 = arith.constant 0 : i32
    %c0_i32_0 = arith.constant 0 : i32
    %c0_i32_1 = arith.constant 0 : i32
    return %c0_i32, %c0_i32_0 : i32, i32
  }
  func.func @transform_3(%arg0: i32) -> (i32, i32) {
    %c0_i32 = arith.constant 0 : i32
    %c0_i32_0 = arith.constant 0 : i32
    %c0_i32_1 = arith.constant 0 : i32
    return %c0_i32, %c0_i32_0 : i32, i32
  }
  func.func @transform_4(%arg0: i32) -> (i32, i32) {
    %c0_i32 = arith.constant 0 : i32
    %c0_i32_0 = arith.constant 0 : i32
    %c0_i32_1 = arith.constant 0 : i32
    return %c0_i32, %c0_i32_0 : i32, i32
  }
  func.func @transform_5(%arg0: i32) -> (i32, i32) {
    %c0_i32 = arith.constant 0 : i32
    %c0_i32_0 = arith.constant 0 : i32
    %c0_i32_1 = arith.constant 0 : i32
    return %c0_i32, %c0_i32_0 : i32, i32
  }
  func.func @transform_6(%arg0: i32) -> (i32, i32) {
    %c0_i32 = arith.constant 0 : i32
    %c0_i32_0 = arith.constant 0 : i32
    %c0_i32_1 = arith.constant 0 : i32
    return %c0_i32, %c0_i32_0 : i32, i32
  }
  func.func @transform_7(%arg0: i32) -> (i32, i32) {
    %c0_i32 = arith.constant 0 : i32
    %c0_i32_0 = arith.constant 0 : i32
    %c0_i32_1 = arith.constant 0 : i32
    return %c0_i32, %c0_i32_0 : i32, i32
  }
  func.func @transform_8(%arg0: i32) -> (i32, i32) {
    %c0_i32 = arith.constant 0 : i32
    %c0_i32_0 = arith.constant 0 : i32
    %c0_i32_1 = arith.constant 0 : i32
    return %c0_i32, %c0_i32_0 : i32, i32
  }
  func.func @transform_9(%arg0: i32) -> (i32, i32) {
    %c0_i32 = arith.constant 0 : i32
    %c0_i32_0 = arith.constant 0 : i32
    return %arg0, %c0_i32 : i32, i32
  }
}

</mosaic_0001>

<bundles_post_ra>
// kernel: tpu_custom_call.1
= control target key start
LH: loop header
LB: loop body
LE: loop exit
PB: predicated region body
PF: predicated region fallthrough
CT: control target
= control target key end

     0   :  { %s2767_s0 = inlined_call_operand.hbm [shape: f32[256,128], index: 0, kind: input, shape index: {}]   ;;  %s2768_s1 = inlined_call_operand.hbm [shape: bf16[128,256], index: 1, kind: input, shape index: {}]   ;;  %s2769_s2 = inlined_call_operand.vmem [shape: f32[1,256], index: 2, kind: input, shape index: {}]   ;;  %s2770_s3 = inlined_call_operand.hbm [shape: bf16[256,128], index: 3, kind: input, shape index: {}]   ;;  %s2771_s4 = inlined_call_operand.vmem [shape: f32[1,128], index: 4, kind: input, shape index: {}]   ;;  %s2772_s5 = inlined_call_operand.hbm [shape: bf16[128,256], index: 5, kind: input, shape index: {}]   ;;  %s2773_s6 = inlined_call_operand.vmem [shape: f32[1,256], index: 6, kind: input, shape index: {}]   ;;  %s2774_s7 = inlined_call_operand.hbm [shape: bf16[256,128], index: 7, kind: input, shape index: {}]   ;;  %s2775_s8 = inlined_call_operand.vmem [shape: f32[1,128], index: 8, kind: input, shape index: {}]   ;;  %s2776_s9 = inlined_call_operand.hbm [shape: f32[256,128], index: 9, kind: output, shape index: {}]  }
   0x1   :  { %2785 = sst [smem:[#allocation18_spill]] %s2776_s9 }
   0x2   :  { %14 = vsyncpa [#allocation3], 0 }
   0x3   :  { %16 = vsyncpa [#allocation3 + $0x1], 0 }
   0x4   :  { %17 = vsyncpa [#allocation6], 0 }
   0x5   :  { %18 = vsyncpa [#allocation9], 0 }
   0x6   :  { %19 = vsyncpa [#allocation4], 0 }
   0x7   :  { %21 = vsyncpa [#allocation4 + $0x1], 0  ;;  %s2292_s30 = smov 0   ;;  %s2294_s10 = smov 0  }
   0x8   :  { %s2296_s11 = smov 0   ;;  %s2298_s12 = smov 0  }
   0x9 LB: > { %2786 = sst [smem:[#allocation16_spill]] %s2215_s30  ;;  %s2313_s13 = sadd.s32 4294967295, %s2227_s12   ;;  %s2227_s12 = sphi %s2298_s12, %s2812_s12   ;;  %s2223_s11 = sphi %s2296_s11, %s2811_s11   ;;  %s2219_s10 = sphi %s2294_s10, %s2810_s10   ;;  %s2215_s30 = sphi %s2292_s30, %s2809_s30  }
   0xa   : > { %s1619_s14 = sadd.s32 4294967294, %s2227_s12   ;;  %p47_p0 = scmp.ne.s32.totalorder %s2219_s10, %s2215_s30 }
   0xb   : > { %p2777_p1 = scmp.eq.s32.totalorder %s2313_s13, 0  ;;  %p245_p3 = scmp.eq.s32.totalorder %s1619_s14, 1 }
   0xc   : > { %p1620_p5 = scmp.ge.s32.totalorder %s2227_s12, 1  ;;  %p252_p7 = scmp.lt.s32.totalorder %s2227_s12, 3 }
   0xd   : > { %p2322_p4 = por %p2777_p1, %p47_p0  ;;  %p2327_p6 = por %p245_p3, %p47_p0 }
   0xe   : > { %p2332_p8 = pnand %p1620_p5, %p252_p7  ;;  %s2229_s18 = smov [#allocation5]  }
   0xf   : > { %s2787_s15 = scalar_select %p2322_p4, 1, 0 }
  0x10   : > { %s2788_s16 = scalar_select %p2327_p6, 1, 0 }
  0x11   : > { %s2790_s17 = scalar_select %p2332_p8, 1, 0 }
  0x12   : > { %2789 = sst [smem:[#allocation17_spill]] %s2788_s16  ;;  %s264_s19 = sshll.u32 %s2229_s18, 4  ;;  %s2336_s19 = int_to_ptr.vmem [resolvable:$true] %s264_s19 }
  0x13   : > { %p1857_p9 = pneg %p2332_p8  ;;  %s2230_s21 = smov [#allocation8]  }
  0x14   : > { %s296_s22 = sshll.u32 %s2230_s21, 4  ;;  %s2231_s23 = smov [#allocation7]   ;;  %s2347_s22 = int_to_ptr.vmem [resolvable:$true] %s296_s22 }
  0x15   : > { %p2343_p11 = pnand %p1857_p9, %p2777_p1  ;;  %s2349_s24 = sshll.u32 %s2231_s23, 4  ;;  %s281_s24 = int_to_ptr.vmem [resolvable:$true] %s2349_s24 }
  0x16   : > { %s2011_s27 = scalar_lea.hbm %s2768_s1, 2048 }
  0x17   : > { %p2012_p12 = scmp.ne.s32.totalorder %s2768_s1, %s2011_s27  ;;  %p2359_p13 = pneg %p2343_p11 }
  0x18   : > { %p2018_p5 = scmp.lt.u32.totalorder %s2011_s27, %s2768_s1 }
  0x19   : > { %p2014_p0 = pnand %p2359_p13, %p2012_p12 }
  0x1b   : > { %p2015_p3 = pneg %p2014_p0 }
  0x1d   : > { %p2020_p7 = pnand %p2018_p5, %p2015_p3 }
  0x1f   : > { %2023 = shalt.err (!%p2020_p7)
}
  0x20   : > { %s2024_s23 = scalar_lea.vmem %s2336_s19, 2048  ;;  %p2032_p2 = scmp.lt.s32.totalorder %s2336_s19, %s2336_s19 }
  0x21   : > { %p2025_p9 = scmp.ne.s32.totalorder %s2336_s19, %s2024_s23  ;;  %p2033_p6 = scmp.lt.s32.totalorder %s2024_s23, %s2024_s23 }
  0x23   : > { %p2027_p10 = pnand %p2025_p9, %p2359_p13  ;;  %p2034_p12 = por %p2033_p6, %p2032_p2 }
  0x25   : > { %p2028_p1 = pneg %p2027_p10 }
  0x27   : > { %p2035_p0 = pnand %p2034_p12, %p2028_p1 }
  0x29   : > { %2038 = shalt.err (!%p2035_p0)
}
  0x2a   : > { %s2783_s25 = smov 128   ;;  %s2784_s26 = smov 8  }
  0x2b   : > { %1860 = dma.hbm_to_vmem [thread:$0]  (!%p2343_p11), %s2768_s1, 2048, %s2336_s19, [#allocation6], %s2783_s25, %s2783_s25, %s2784_s26  }
  0x2c   : > { %s2039_s21 = scalar_lea.hbm %s2772_s5, 2048 }
  0x2d   : > { %p2040_p1 = scmp.ne.s32.totalorder %s2772_s5, %s2039_s21  ;;  %p2046_p10 = scmp.lt.u32.totalorder %s2039_s21, %s2772_s5 }
  0x2f   : > { %p2042_p2 = pnand %p2040_p1, %p2359_p13 }
  0x31   : > { %p2043_p6 = pneg %p2042_p2 }
  0x33   : > { %p2048_p3 = pnand %p2046_p10, %p2043_p6 }
  0x35   : > { %2051 = shalt.err (!%p2048_p3)
}
  0x36   : > { %s2052_s19 = scalar_lea.vmem %s2347_s22, 2048  ;;  %p2060_p12 = scmp.lt.s32.totalorder %s2347_s22, %s2347_s22 }
  0x37   : > { %p2053_p5 = scmp.ne.s32.totalorder %s2347_s22, %s2052_s19  ;;  %p2061_p0 = scmp.lt.s32.totalorder %s2052_s19, %s2052_s19 }
  0x39   : > { %p2055_p7 = pnand %p2053_p5, %p2359_p13  ;;  %p2062_p1 = por %p2061_p0, %p2060_p12 }
  0x3b   : > { %p2056_p9 = pneg %p2055_p7 }
  0x3d   : > { %p2063_p2 = pnand %p2062_p1, %p2056_p9 }
  0x3f   : > { %2066 = shalt.err (!%p2063_p2)
}
  0x40   : > { %1866 = dma.hbm_to_vmem [thread:$0]  (!%p2343_p11), %s2772_s5, 2048, %s2347_s22, [#allocation9], %s2783_s25, %s2783_s25, %s2784_s26  }
  0x41   : > { %s2067_s28 = scalar_lea.hbm %s2770_s3, 2048 }
  0x42   : > { %p2068_p6 = scmp.ne.s32.totalorder %s2770_s3, %s2067_s28  ;;  %p2074_p5 = scmp.lt.u32.totalorder %s2067_s28, %s2770_s3 }
  0x44   : > { %p2070_p10 = pnand %p2068_p6, %p2359_p13 }
  0x46   : > { %p2071_p3 = pneg %p2070_p10 }
  0x48   : > { %p2076_p7 = pnand %p2074_p5, %p2071_p3 }
  0x4a   : > { %2079 = shalt.err (!%p2076_p7)
}
  0x4b   : > { %s2080_s19 = scalar_lea.vmem %s281_s24, 2048  ;;  %p2088_p1 = scmp.lt.s32.totalorder %s281_s24, %s281_s24 }
  0x4c   : > { %p2081_p9 = scmp.ne.s32.totalorder %s281_s24, %s2080_s19  ;;  %p2089_p2 = scmp.lt.s32.totalorder %s2080_s19, %s2080_s19 }
  0x4e   : > { %p2083_p12 = pnand %p2081_p9, %p2359_p13  ;;  %p2090_p4 = por %p2089_p2, %p2088_p1 }
  0x50   : > { %p2084_p0 = pneg %p2083_p12 }
  0x52   : > { %p2091_p8 = pnand %p2090_p4, %p2084_p0 }
  0x54   : > { %2094 = shalt.err (!%p2091_p8)
}
  0x55   : > { %s2234_s22 = smov 64   ;;  %s2235_s9 = smov 4  }
  0x56   : > { %1863 = dma.hbm_to_vmem [thread:$0]  (!%p2343_p11), %s2770_s3, 2048, %s281_s24, [#allocation6], %s2234_s22, %s2234_s22, %s2235_s9  }
  0x57   : > { %s2236_s27 = smov [#allocation10]   ;;  %s2095_s21 = scalar_lea.hbm %s2774_s7, 2048 }
  0x58   : > { %s312_s28 = sshll.u32 %s2236_s27, 4  ;;  %p2096_p4 = scmp.ne.s32.totalorder %s2774_s7, %s2095_s21  ;;  %s313_s28 = int_to_ptr.vmem [resolvable:$true] %s312_s28 }
  0x59   : > { %p2102_p10 = scmp.lt.u32.totalorder %s2095_s21, %s2774_s7 }
  0x5a   : > { %p2098_p8 = pnand %p2096_p4, %p2359_p13 }
  0x5c   : > { %p2099_p6 = pneg %p2098_p8 }
  0x5e   : > { %p2104_p3 = pnand %p2102_p10, %p2099_p6 }
  0x60   : > { %2107 = shalt.err (!%p2104_p3)
}
  0x61   : > { %s2108_s24 = scalar_lea.vmem %s313_s28, 2048  ;;  %p2116_p12 = scmp.lt.s32.totalorder %s313_s28, %s313_s28 }
  0x62   : > { %p2109_p5 = scmp.ne.s32.totalorder %s313_s28, %s2108_s24  ;;  %p2117_p0 = scmp.lt.s32.totalorder %s2108_s24, %s2108_s24 }
  0x64   : > { %p2111_p7 = pnand %p2109_p5, %p2359_p13  ;;  %p2118_p1 = por %p2117_p0, %p2116_p12 }
  0x66   : > { %p2112_p9 = pneg %p2111_p7 }
  0x68   : > { %p2119_p2 = pnand %p2118_p1, %p2112_p9 }
  0x6a   : > { %2122 = shalt.err (!%p2119_p2)
}
  0x6b   : > { %1869 = dma.hbm_to_vmem [thread:$0]  (!%p2343_p11), %s2774_s7, 2048, %s313_s28, [#allocation9], %s2234_s22, %s2234_s22, %s2235_s9  }
  0x6c   : > { %s2447_s14 = sadd.s32 1, %s2227_s12   ;;  %s34_s25 = sadd.s32 1, %s2223_s11 }
  0x6d   : > { %s31_s20 = ssub.s32 %s2227_s12, %s2447_s14  ;;  %p41_p13 = scmp.ne.s32.totalorder %s2223_s11, %s2219_s10 }
  0x6e   : > { %p32_p4 = scmp.eq.s32.totalorder %s31_s20, 0  ;;  %p42_p8 = scmp.eq.s32.totalorder %s2227_s12, 0 }
  0x6f   : > { %p2793_p6 = scmp.eq.s32.totalorder %s2313_s13, 1  ;;  %p1882_p3 = scmp.lt.s32.totalorder %s2227_s12, 2 }
  0x70   : > { %s2463_s27 = scalar_select %p32_p4, %s2223_s11, %s34_s25  }
  0x71   : > { %p2457_p10 = por %p2793_p6, %p41_p13  ;;  %p43_p5 = por %p42_p8, %p41_p13 }
  0x72   : > { %s329_s29 = sand.u32 1, %s2223_s11   ;;  %s1707_s22 = sshll.u32 %s2227_s12, 11 }
  0x73   : > { %s1626_s18 = sshll.u32 %s329_s29, 7  ;;  %s2470_s21 = scalar_lea.hbm %s2767_s0, %s1707_s22 }
  0x74   : > { %s333_s23 = scalar_lea.vmem [#allocation2], %s1626_s18  ;;  %p2474_p11 = pnand %p1882_p3, %p43_p5 }
  0x75   : > { %s340_s19 = sshll.u32 %s333_s23, 4  ;;  %s2478_s30 = scalar_lea.sflag [#allocation3], %s329_s29  ;;  %s2472_s19 = int_to_ptr.vmem [resolvable:$true] %s340_s19 }
  0x76   : > { %s2123_s16 = scalar_lea.hbm %s2470_s21, 2048  ;;  %p2125_p9 = pneg %p2474_p11 }
  0x77   : > { %p2124_p7 = scmp.ne.s32.totalorder %s2470_s21, %s2123_s16  ;;  %s2128_s18 = scalar_lea.hbm %s2767_s0, 4096 }
  0x78   : > { %p2129_p1 = scmp.lt.u32.totalorder %s2470_s21, %s2767_s0  ;;  %p2130_p2 = scmp.lt.u32.totalorder %s2128_s18, %s2123_s16 }
  0x79   : > { %p2126_p12 = pnand %p2125_p9, %p2124_p7  ;;  %p2132_p4 = scmp.lt.u32.totalorder %s2123_s16, %s2470_s21 }
  0x7a   : > { %p2131_p13 = por %p2130_p2, %p2129_p1 }
  0x7b   : > { %p2127_p0 = pneg %p2126_p12 }
  0x7c   : > { %p2133_p8 = por %p2132_p4, %p2131_p13 }
  0x7e   : > { %p2134_p6 = pnand %p2133_p8, %p2127_p0 }
  0x80   : > { %2137 = shalt.err (!%p2134_p6)
}
  0x81   : > { %s2138_s29 = scalar_lea.vmem %s2472_s19, 2048  ;;  %s2237_s28 = smov [#allocation2]  }
  0x82   : > { %p2139_p3 = scmp.ne.s32.totalorder %s2472_s19, %s2138_s29  ;;  %s2143_s23 = sshll.u32 %s2237_s28, 4  ;;  %s2144_s23 = int_to_ptr.vmem [resolvable:$false] %s2143_s23 }
  0x83   : > { %s2145_s25 = scalar_lea.vmem %s2144_s23, 4096  ;;  %p2146_p12 = scmp.lt.s32.totalorder %s2472_s19, %s2144_s23 }
  0x84   : > { %p2141_p5 = pnand %p2139_p3, %p2125_p9  ;;  %p2147_p1 = scmp.lt.s32.totalorder %s2145_s25, %s2138_s29 }
  0x86   : > { %p2142_p7 = pneg %p2141_p5  ;;  %p2148_p2 = por %p2147_p1, %p2146_p12 }
  0x88   : > { %p2149_p13 = pnand %p2148_p2, %p2142_p7 }
  0x8a   : > { %2152 = shalt.err (!%p2149_p13)
}
  0x8b   : > { %s2796_s16 = smov 8   ;;  %s2797_s20 = smov 128  }
  0x8c   : > { %1873 = dma.hbm_to_vmem [thread:$0]  (!%p2474_p11), %s2470_s21, 2048, %s2472_s19, %s2478_s30, %s2797_s20, %s2797_s20, %s2796_s16  }
  0x8d   : > { %p2798_p9 = scmp.ne.s32.totalorder %s2790_s17, 0 }
  0x8e   : > { %s2512_s18 = sand.u32 (!%p2798_p9), 1, %s2219_s10   ;;  %p2799_p0 = scmp.ne.s32.totalorder (!%p2798_p9), %s2787_s15, 0 }
  0x8f   : > { %352 = sbr.rel (%p2798_p9) target bundleno = 1150 (0x47e), region = 56  ;;  %s1630_s22 = sshll.u32 (!%p2798_p9), %s2512_s18, 7 }
  0x90   : > { %s355_s9 = scalar_lea.sflag (!%p2798_p9), [#allocation3], %s2512_s18  ;;  %s2518_s24 = scalar_lea.vmem (!%p2798_p9), [#allocation2], %s1630_s22 }
  0x96   : > { %2198 = dma.done.wait (%p2799_p0), %s355_s9, 2048  }
  0x97   : > { %2200 = vsyncadd (%p2799_p0), %s355_s9, 4294965248  ;;  %p2800_p11 = scmp.eq.s32.totalorder %s2313_s13, 0 }
  0x99   : > { %2202 = dma.done.wait (%p2800_p11), [#allocation6], 4096   ;;  %p2801_p4 = pmov %p2800_p11 }
  0x9b   : > { %2204 = vsyncadd (%p2801_p4), [#allocation6], 4294963200  ;;  %p2802_p8 = pmov %p2801_p4 }
  0x9c   : > { %p2803_p6 = pmov %p2801_p4 }
  0x9d   : > { %2206 = dma.done.wait (%p2802_p8), [#allocation9], 4096  }
  0x9e   : > { %2208 = vsyncadd (%p2803_p6), [#allocation9], 4294963200  ;;  %v2238_v0 = vmov 0   ;;  %v1931_v1 = vld [vmem:[#allocation5 + $0x4] ss:$8 sps:$4 sm:$0xff]   ;;  %v1959_v18 = vld [vmem:[#allocation7 + $0x50] sm:$0xff]  }
  0x9f   : > { %576 = vmatprep.mubr.bf16.mxu0 %v2238_v0  ;;  %v1933_v2 = vld [vmem:[#allocation5] ss:$8 sps:$4 sm:$0xff]   ;;  %544 = vmatprep.subr.bf16.mxu0 %v1931_v1  ;;  %v1934_v3 = vld [vmem:[#allocation5 + $0x14] ss:$8 sps:$4 sm:$0xff]   ;;  %v1936_v4 = vld [vmem:[#allocation5 + $0x10] ss:$8 sps:$4 sm:$0xff]  }
  0xa0   : > { %545 = vmatpush1.bf16.msra.mxu0 %v1933_v2  ;;  %v1937_v5 = vld [vmem:[#allocation5 + $0x24] ss:$8 sps:$4 sm:$0xff]   ;;  %v1939_v6 = vld [vmem:[#allocation5 + $0x20] ss:$8 sps:$4 sm:$0xff]   ;;  %v1940_v7 = vld [vmem:[#allocation5 + $0x34] ss:$8 sps:$4 sm:$0xff]  }
  0xa1   : > { %546 = vmatprep.subr.bf16.mxu0 %v1934_v3  ;;  %v1942_v8 = vld [vmem:[#allocation5 + $0x30] ss:$8 sps:$4 sm:$0xff]   ;;  %v1943_v9 = vld [vmem:[#allocation5 + $0x44] ss:$8 sps:$4 sm:$0xff]   ;;  %v1945_v10 = vld [vmem:[#allocation5 + $0x40] ss:$8 sps:$4 sm:$0xff]  }
  0xa2   : > { %v1946_v11 = vld [vmem:[#allocation5 + $0x54] ss:$8 sps:$4 sm:$0xff]   ;;  %v1955_v12 = vld [vmem:[#allocation7 + $0x40] sm:$0xff]   ;;  %v1948_v13 = vld [vmem:[#allocation5 + $0x50] ss:$8 sps:$4 sm:$0xff]   ;;  %s2684_s25 = scalar_lea.vmem [#allocation11], %s1630_s22 }
  0xa3   : > { %v1956_v14 = vld [vmem:[#allocation7] sm:$0xff]   ;;  %1709 = vmatprep.subr.bf16.mxu1 %v1955_v12  ;;  %v1957_v16 = vld [vmem:[#allocation7 + $0x48] sm:$0xff]   ;;  %v1952_v20 = vld [vmem:[#allocation5 + $0x74] ss:$8 sps:$4 sm:$0xff]   ;;  %s1708_s16 = sshll.u32 %s2313_s13, 11  ;;  %s1508_s20 = sshll.u32 %s2684_s25, 4  ;;  %s2721_s20 = int_to_ptr.vmem [resolvable:$true] %s1508_s20 }
  0xa4   : > { %547 = vmatpush1.bf16.msra.mxu0 %v1936_v4  ;;  %v1949_v15 = vld [vmem:[#allocation5 + $0x64] ss:$8 sps:$4 sm:$0xff]   ;;  %1710 = vmatpush3.bf16.msra.mxu1 %v1956_v14  ;;  %v1951_v19 = vld [vmem:[#allocation5 + $0x60] ss:$8 sps:$4 sm:$0xff]   ;;  %v1960_v21 = vld [vmem:[#allocation7 + $0x10] sm:$0xff]   ;;  %s1495_s17 = scalar_lea.sflag [#allocation4], %s2512_s18 }
  0xa5   : > { %548 = vmatprep.subr.bf16.mxu0 %v1937_v5  ;;  %v1958_v17 = vld [vmem:[#allocation7 + $0x8] sm:$0xff]   ;;  %1711 = vmatprep.subr.bf16.mxu1 %v1957_v16  ;;  %v1961_v22 = vld [vmem:[#allocation7 + $0x58] sm:$0xff]   ;;  %v412_v24 = vld [vmem:[%s2518_s24] sm:$0xff]  ;;  %s2153_s21 = scalar_lea.vmem %s2721_s20, 2048  ;;  %s2239_s13 = smov [#allocation11]  }
  0xa6   : > { %v1954_v23 = vld [vmem:[#allocation5 + $0x70] ss:$8 sps:$4 sm:$0xff]   ;;  %v413_v25 = vld [vmem:[%s2518_s24 + $0x8] sm:$0xff]  ;;  %v1963_v27 = vld [vmem:[#allocation7 + $0x60] sm:$0xff]   ;;  %p2154_p3 = scmp.ne.s32.totalorder %s2721_s20, %s2153_s21  ;;  %s2157_s19 = sshll.u32 %s2239_s13, 4  ;;  %s2158_s19 = int_to_ptr.vmem [resolvable:$false] %s2157_s19 }
  0xa7   : > { %v1962_v26 = vld [vmem:[#allocation7 + $0x18] sm:$0xff]   ;;  %v1964_v28 = vld [vmem:[#allocation7 + $0x20] sm:$0xff]   ;;  %v428_v29 = vpack.c.bf16 %v413_v25, %v412_v24  ;;  %v1965_v30 = vld [vmem:[#allocation7 + $0x68] sm:$0xff]   ;;  %s2159_s30 = scalar_lea.vmem %s2158_s19, 4096  ;;  %p2160_p12 = scmp.lt.s32.totalorder %s2721_s20, %s2158_s19 }
  0xa8   : > { %549 = vmatpush1.bf16.msra.mxu0 %v1939_v6  ;;  %1712 = vmatpush3.bf16.msra.mxu1 %v1958_v17  ;;  %v414_v31 = vld [vmem:[%s2518_s24 + $0x10] sm:$0xff]  ;;  %v415_v32 = vld [vmem:[%s2518_s24 + $0x18] sm:$0xff]  ;;  %v416_v34 = vld [vmem:[%s2518_s24 + $0x20] sm:$0xff]  ;;  %p2155_p5 = pnand %p2154_p3, %p2457_p10  ;;  %p2161_p1 = scmp.lt.s32.totalorder %s2159_s30, %s2153_s21 }
  0xa9   : > { %550 = vmatprep.subr.bf16.mxu0 %v1940_v7  ;;  %1713 = vmatprep.subr.bf16.mxu1 %v1959_v18  ;;  %v429_v33 = vpack.c.bf16 %v415_v32, %v414_v31  ;;  %v417_v35 = vld [vmem:[%s2518_s24 + $0x28] sm:$0xff]  ;;  %v418_v37 = vld [vmem:[%s2518_s24 + $0x30] sm:$0xff]  ;;  %v419_v38 = vld [vmem:[%s2518_s24 + $0x38] sm:$0xff] }
  0xaa   : > { %v430_v36 = vpack.c.bf16 %v417_v35, %v416_v34  ;;  %v431_v39 = vpack.c.bf16 %v419_v38, %v418_v37  ;;  %v420_v40 = vld [vmem:[%s2518_s24 + $0x40] sm:$0xff]  ;;  %v421_v41 = vld [vmem:[%s2518_s24 + $0x48] sm:$0xff]  ;;  %v422_v43 = vld [vmem:[%s2518_s24 + $0x50] sm:$0xff]  ;;  %p2156_p7 = pneg %p2155_p5  ;;  %p2162_p2 = por %p2161_p1, %p2160_p12 }
  0xab   : > { %v432_v42 = vpack.c.bf16 %v421_v41, %v420_v40  ;;  %v423_v44 = vld [vmem:[%s2518_s24 + $0x58] sm:$0xff]  ;;  %v424_v46 = vld [vmem:[%s2518_s24 + $0x60] sm:$0xff]  ;;  %v425_v47 = vld [vmem:[%s2518_s24 + $0x68] sm:$0xff] }
  0xac   : > { %551 = vmatpush1.bf16.msra.mxu0 %v1942_v8  ;;  %1714 = vmatpush3.bf16.msra.mxu1 %v1960_v21  ;;  %v433_v45 = vpack.c.bf16 %v423_v44, %v422_v43  ;;  %v434_v48 = vpack.c.bf16 %v425_v47, %v424_v46  ;;  %v426_v49 = vld [vmem:[%s2518_s24 + $0x70] sm:$0xff]  ;;  %v427_v50 = vld [vmem:[%s2518_s24 + $0x78] sm:$0xff]  ;;  %v1966_v52 = vld [vmem:[#allocation7 + $0x28] sm:$0xff]   ;;  %v454_v8 = vlaneseq  ;;  %s2804_s24 = sld [smem:[#allocation18_spill]]  ;;  %p2163_p13 = pnand %p2162_p2, %p2156_p7 }
  0xad   : > { %552 = vmatprep.subr.bf16.mxu0 %v1943_v9  ;;  %1715 = vmatprep.subr.bf16.mxu1 %v1961_v22  ;;  %v435_v51 = vpack.c.bf16 %v427_v50, %v426_v49  ;;  %v1967_v53 = vld [vmem:[#allocation7 + $0x70] sm:$0xff]   ;;  %v1969_v55 = vld [vmem:[#allocation7 + $0x78] sm:$0xff]   ;;  %v1971_v57 = vld [vmem:[#allocation8] ss:$8 sps:$4 sm:$0xff]  }
  0xae   : > { %v1968_v54 = vld [vmem:[#allocation7 + $0x30] sm:$0xff]   ;;  %v1970_v56 = vld [vmem:[#allocation7 + $0x38] sm:$0xff]   ;;  %v1973_v58 = vld [vmem:[#allocation8 + $0x4] ss:$8 sps:$4 sm:$0xff]   ;;  %v2557_v9 = vshrl.u32 %v454_v8, 7 }
  0xaf   : > { %v1976_v59 = vld [vmem:[#allocation8 + $0x14] ss:$8 sps:$4 sm:$0xff]   ;;  %v1974_v60 = vld [vmem:[#allocation8 + $0x10] ss:$8 sps:$4 sm:$0xff]   ;;  %v1979_v61 = vld [vmem:[#allocation8 + $0x24] ss:$8 sps:$4 sm:$0xff]  }
  0xb0   : > { %553 = vmatpush1.bf16.msra.mxu0 %v1945_v10  ;;  %1716 = vmatpush3.bf16.msra.mxu1 %v1962_v26  ;;  %v1977_v62 = vld [vmem:[#allocation8 + $0x20] ss:$8 sps:$4 sm:$0xff]   ;;  %v1982_v63 = vld [vmem:[#allocation8 + $0x34] ss:$8 sps:$4 sm:$0xff]   ;;  %v1980_v1 = vld [vmem:[#allocation8 + $0x30] ss:$8 sps:$4 sm:$0xff]  }
  0xb1   : > { %554 = vmatprep.subr.bf16.mxu0 %v1946_v11  ;;  %1717 = vmatprep.subr.bf16.mxu1 %v1963_v27  ;;  %v1985_v2 = vld [vmem:[#allocation8 + $0x44] ss:$8 sps:$4 sm:$0xff]   ;;  %v1983_v3 = vld [vmem:[#allocation8 + $0x40] ss:$8 sps:$4 sm:$0xff]   ;;  %v1988_v4 = vld [vmem:[#allocation8 + $0x54] ss:$8 sps:$4 sm:$0xff]  }
  0xb2   : > { %v1986_v5 = vld [vmem:[#allocation8 + $0x50] ss:$8 sps:$4 sm:$0xff]   ;;  %v1991_v6 = vld [vmem:[#allocation8 + $0x64] ss:$8 sps:$4 sm:$0xff]   ;;  %v1989_v7 = vld [vmem:[#allocation8 + $0x60] ss:$8 sps:$4 sm:$0xff]   ;;  %s2719_s15 = scalar_lea.hbm %s2804_s24, %s1708_s16 }
  0xb3   : > { %v456_v10 = vsub.s32 0, %v2557_v9  ;;  %v452_v11 = vld [vmem:[%s2769_s2] sm:$0x3]  ;;  %v460_v12 = vsub.s32 1, %v2557_v9 }
  0xb4   : > { %555 = vmatpush1.bf16.msra.mxu0 %v1948_v13  ;;  %1718 = vmatpush3.bf16.msra.mxu1 %v1964_v28 }
  0xb5   : > { %556 = vmatprep.subr.bf16.mxu0 %v1949_v15  ;;  %1719 = vmatprep.subr.bf16.mxu1 %v1965_v30  ;;  %v2566_v13 = vrot.slane %v452_v11, %v456_v10  ;;  %v2570_v14 = vrot.slane %v452_v11, %v460_v12 }
  0xb8   : > { %557 = vmatpush1.bf16.msra.mxu0 %v1951_v19  ;;  %1720 = vmatpush3.bf16.msra.mxu1 %v1966_v52 }
  0xb9   : > { %558 = vmatprep.subr.bf16.mxu0 %v1952_v20  ;;  %1721 = vmatprep.subr.bf16.mxu1 %v1967_v53 }
  0xbc   : > { %559 = vmatpush1.bf16.msra.mxu0 %v1954_v23  ;;  %1722 = vmatpush3.bf16.msra.mxu1 %v1968_v54 }
  0xbd   : > { %1723 = vmatprep.subr.bf16.mxu1 %v1969_v55  ;;  %1069 = vmatprep.subr.bf16.mxu0 %v1973_v58 }
  0xbf   : > { %577 = vmatmul.mubr.bf16.vlgmr.msra.gmra.mrb[0].mxu0 %v428_v29 }
  0xc0   : > { %586 = vmatprep.mubr.bf16.mxu0 %v2238_v0  ;;  %1724 = vmatpush3.bf16.msra.mxu1 %v1970_v56 }
  0xc1   : > { %1070 = vmatpush1.bf16.msra.mxu0 %v1971_v57 }
  0xc2   : > { %1071 = vmatprep.subr.bf16.mxu0 %v1976_v59 }
  0xc5   : > { %1072 = vmatpush1.bf16.msra.mxu0 %v1974_v60 }
  0xc6   : > { %1073 = vmatprep.subr.bf16.mxu0 %v1979_v61 }
  0xc7   : > { %587 = vmatmul.mubr.bf16.gmra.mrb[4].mxu0 %v429_v33 }
  0xc8   : > { %596 = vmatprep.mubr.bf16.mxu0 %v2238_v0 }
  0xc9   : > { %1074 = vmatpush1.bf16.msra.mxu0 %v1977_v62 }
  0xca   : > { %1075 = vmatprep.subr.bf16.mxu0 %v1982_v63 }
  0xcd   : > { %1076 = vmatpush1.bf16.msra.mxu0 %v1980_v1 }
  0xce   : > { %1077 = vmatprep.subr.bf16.mxu0 %v1985_v2 }
  0xcf   : > { %597 = vmatmul.mubr.bf16.gmra.mrb[8].mxu0 %v430_v36 }
  0xd0   : > { %606 = vmatprep.mubr.bf16.mxu0 %v2238_v0 }
  0xd1   : > { %1078 = vmatpush1.bf16.msra.mxu0 %v1983_v3 }
  0xd2   : > { %1079 = vmatprep.subr.bf16.mxu0 %v1988_v4 }
  0xd5   : > { %1080 = vmatpush1.bf16.msra.mxu0 %v1986_v5 }
  0xd6   : > { %1081 = vmatprep.subr.bf16.mxu0 %v1991_v6 }
  0xd7   : > { %607 = vmatmul.mubr.bf16.gmra.mrb[12].mxu0 %v431_v39 }
  0xd8   : > { %616 = vmatprep.mubr.bf16.mxu0 %v2238_v0 }
  0xd9   : > { %1082 = vmatpush1.bf16.msra.mxu0 %v1989_v7 }
  0xdf   : > { %617 = vmatmul.mubr.bf16.gmra.mrb[16].mxu0 %v432_v42 }
  0xe0   : > { %626 = vmatprep.mubr.bf16.mxu0 %v2238_v0 }
  0xe7   : > { %627 = vmatmul.mubr.bf16.gmra.mrb[20].mxu0 %v433_v45 }
  0xe8   : > { %636 = vmatprep.mubr.bf16.mxu0 %v2238_v0 }
  0xef   : > { %637 = vmatmul.mubr.bf16.gmra.mrb[24].mxu0 %v434_v48 }
  0xf0   : > { %646 = vmatprep.mubr.bf16.mxu0 %v2238_v0 }
  0xf7   : > { %647 = vmatmul.mubr.bf16.gmra.mrb[28].mxu0 %v435_v51 }
  0xf8   : > { %1101 = vmatprep.mubr.bf16.mxu0 %v2238_v0 }
 0x192   : > { %v578_v15 = vpop.f32.mrb[0].mxu0 }
 0x193   : > { %v579_v16 = vadd.f32 %v578_v15, %v2566_v13  ;;  %v580_v17 = vpop.f32.mrb[1].mxu0 }
 0x194   : > { %v581_v18 = vadd.f32 %v580_v17, %v2570_v14  ;;  %v582_v19 = vpop.f32.mrb[2].mxu0 }
 0x195   : > { %v583_v20 = vadd.f32 %v582_v19, %v2566_v13  ;;  %v584_v21 = vpop.f32.mrb[3].mxu0  ;;  %v657_v23 = vmax.f32 %v579_v16, 0.0 }
 0x196   : > { %v585_v22 = vadd.f32 %v584_v21, %v2570_v14  ;;  %v658_v25 = vmax.f32 %v581_v18, 0.0 }
 0x197   : > { %v659_v24 = vmax.f32 %v583_v20, 0.0 }
 0x198   : > { %v660_v26 = vmax.f32 %v585_v22, 0.0 }
 0x199   : > { %v689_v27 = vpack.c.bf16 %v659_v24, %v657_v23 }
 0x19a   : > { %v588_v28 = vpop.f32.mrb[4].mxu0  ;;  %v690_v29 = vpack.c.bf16 %v660_v26, %v658_v25 }
 0x19b   : > { %v589_v30 = vadd.f32 %v588_v28, %v2566_v13  ;;  %v590_v31 = vpop.f32.mrb[5].mxu0 }
 0x19c   : > { %v591_v32 = vadd.f32 %v590_v31, %v2570_v14  ;;  %v592_v33 = vpop.f32.mrb[6].mxu0  ;;  %872 = vmatprep.mubr.bf16.mxu1 %v690_v29 }
 0x19d   : > { %v593_v34 = vadd.f32 %v592_v33, %v2566_v13  ;;  %v594_v35 = vpop.f32.mrb[7].mxu0  ;;  %873 = vmatmul.mubr.bf16.vlgmr.msra.gmra.mrb[0].mxu1 %v689_v27  ;;  %v661_v37 = vmax.f32 %v589_v30, 0.0 }
 0x19e   : > { %v595_v36 = vadd.f32 %v594_v35, %v2570_v14  ;;  %v662_v39 = vmax.f32 %v591_v32, 0.0 }
 0x19f   : > { %v663_v38 = vmax.f32 %v593_v34, 0.0 }
 0x1a0   : > { %v664_v40 = vmax.f32 %v595_v36, 0.0 }
 0x1a1   : > { %v691_v41 = vpack.c.bf16 %v663_v38, %v661_v37 }
 0x1a2   : > { %v692_v42 = vpack.c.bf16 %v664_v40, %v662_v39  ;;  %v598_v43 = vpop.f32.mrb[8].mxu0 }
 0x1a3   : > { %v599_v44 = vadd.f32 %v598_v43, %v2566_v13  ;;  %v600_v45 = vpop.f32.mrb[9].mxu0 }
 0x1a4   : > { %v601_v46 = vadd.f32 %v600_v45, %v2570_v14  ;;  %v602_v47 = vpop.f32.mrb[10].mxu0  ;;  %880 = vmatprep.mubr.bf16.mxu1 %v692_v42 }
 0x1a5   : > { %v603_v48 = vadd.f32 %v602_v47, %v2566_v13  ;;  %v604_v49 = vpop.f32.mrb[11].mxu0  ;;  %881 = vmatmul.mubr.bf16.gmra.mrb[4].mxu1 %v691_v41  ;;  %v665_v51 = vmax.f32 %v599_v44, 0.0 }
 0x1a6   : > { %v605_v50 = vadd.f32 %v604_v49, %v2570_v14  ;;  %v666_v53 = vmax.f32 %v601_v46, 0.0 }
 0x1a7   : > { %v667_v52 = vmax.f32 %v603_v48, 0.0 }
 0x1a8   : > { %v668_v54 = vmax.f32 %v605_v50, 0.0 }
 0x1a9   : > { %v693_v55 = vpack.c.bf16 %v667_v52, %v665_v51 }
 0x1aa   : > { %v694_v56 = vpack.c.bf16 %v668_v54, %v666_v53  ;;  %v608_v57 = vpop.f32.mrb[12].mxu0 }
 0x1ab   : > { %v609_v58 = vadd.f32 %v608_v57, %v2566_v13  ;;  %v610_v59 = vpop.f32.mrb[13].mxu0 }
 0x1ac   : > { %v611_v60 = vadd.f32 %v610_v59, %v2570_v14  ;;  %v612_v61 = vpop.f32.mrb[14].mxu0  ;;  %888 = vmatprep.mubr.bf16.mxu1 %v694_v56 }
 0x1ad   : > { %v613_v62 = vadd.f32 %v612_v61, %v2566_v13  ;;  %v614_v63 = vpop.f32.mrb[15].mxu0  ;;  %889 = vmatmul.mubr.bf16.gmra.mrb[8].mxu1 %v693_v55  ;;  %v669_v2 = vmax.f32 %v609_v58, 0.0 }
 0x1ae   : > { %v615_v1 = vadd.f32 %v614_v63, %v2570_v14  ;;  %v670_v4 = vmax.f32 %v611_v60, 0.0 }
 0x1af   : > { %v671_v3 = vmax.f32 %v613_v62, 0.0 }
 0x1b0   : > { %v672_v5 = vmax.f32 %v615_v1, 0.0 }
 0x1b1   : > { %v695_v6 = vpack.c.bf16 %v671_v3, %v669_v2 }
 0x1b2   : > { %v696_v7 = vpack.c.bf16 %v672_v5, %v670_v4  ;;  %v618_v8 = vpop.f32.mrb[16].mxu0 }
 0x1b3   : > { %v619_v11 = vadd.f32 %v618_v8, %v2566_v13  ;;  %v620_v15 = vpop.f32.mrb[17].mxu0  ;;  %v1995_v8 = vld [vmem:[#allocation10 + $0x40] sm:$0xff]  }
 0x1b4   : > { %v621_v16 = vadd.f32 %v620_v15, %v2570_v14  ;;  %v622_v17 = vpop.f32.mrb[18].mxu0  ;;  %896 = vmatprep.mubr.bf16.mxu1 %v696_v7  ;;  %v1992_v7 = vld [vmem:[#allocation8 + $0x70] ss:$8 sps:$4 sm:$0xff]   ;;  %v1997_v15 = vld [vmem:[#allocation10 + $0x48] sm:$0xff]   ;;  %1773 = vmatprep.subr.bf16.mxu1 %v1995_v8 }
 0x1b5   : > { %v623_v18 = vadd.f32 %v622_v17, %v2566_v13  ;;  %v624_v19 = vpop.f32.mrb[19].mxu0  ;;  %897 = vmatmul.mubr.bf16.gmra.mrb[12].mxu1 %v695_v6  ;;  %v673_v21 = vmax.f32 %v619_v11, 0.0  ;;  %v1994_v6 = vld [vmem:[#allocation8 + $0x74] ss:$8 sps:$4 sm:$0xff]   ;;  %v1996_v11 = vld [vmem:[#allocation10] sm:$0xff]  }
 0x1b6   : > { %v625_v20 = vadd.f32 %v624_v19, %v2570_v14  ;;  %v674_v23 = vmax.f32 %v621_v16, 0.0  ;;  %1083 = vmatprep.subr.bf16.mxu0 %v1994_v6  ;;  %1774 = vmatpush3.bf16.msra.mxu1 %v1996_v11  ;;  %v2000_v16 = vld [vmem:[#allocation10 + $0x10] sm:$0xff]   ;;  %v2001_v17 = vld [vmem:[#allocation10 + $0x58] sm:$0xff]   ;;  %v2003_v19 = vld [vmem:[#allocation10 + $0x60] sm:$0xff]  }
 0x1b7   : > { %v675_v22 = vmax.f32 %v623_v18, 0.0  ;;  %1084 = vmatpush1.bf16.msra.mxu0 %v1992_v7  ;;  %1775 = vmatprep.subr.bf16.mxu1 %v1997_v15  ;;  %v2002_v18 = vld [vmem:[#allocation10 + $0x18] sm:$0xff]  }
 0x1b8   : > { %v676_v24 = vmax.f32 %v625_v20, 0.0  ;;  %v2004_v20 = vld [vmem:[#allocation10 + $0x20] sm:$0xff]  }
 0x1b9   : > { %v697_v25 = vpack.c.bf16 %v675_v22, %v673_v21  ;;  %v2005_v21 = vld [vmem:[#allocation10 + $0x68] sm:$0xff]  }
 0x1ba   : > { %v698_v26 = vpack.c.bf16 %v676_v24, %v674_v23  ;;  %v628_v27 = vpop.f32.mrb[20].mxu0  ;;  %v2006_v22 = vld [vmem:[#allocation10 + $0x28] sm:$0xff]   ;;  %v2007_v23 = vld [vmem:[#allocation10 + $0x70] sm:$0xff]  }
 0x1bb   : > { %v629_v28 = vadd.f32 %v628_v27, %v2566_v13  ;;  %v630_v29 = vpop.f32.mrb[21].mxu0  ;;  %v2008_v24 = vld [vmem:[#allocation10 + $0x30] sm:$0xff]  }
 0x1bc   : > { %v631_v30 = vadd.f32 %v630_v29, %v2570_v14  ;;  %v632_v31 = vpop.f32.mrb[22].mxu0  ;;  %904 = vmatprep.mubr.bf16.mxu1 %v698_v26  ;;  %v2607_v26 = vld [vmem:[%s2771_s4] ss:$0 sm:$0xff] }
 0x1bd   : > { %v633_v32 = vadd.f32 %v632_v31, %v2566_v13  ;;  %v634_v33 = vpop.f32.mrb[23].mxu0  ;;  %905 = vmatmul.mubr.bf16.gmra.mrb[16].mxu1 %v697_v25  ;;  %v677_v35 = vmax.f32 %v629_v28, 0.0 }
 0x1be   : > { %v635_v34 = vadd.f32 %v634_v33, %v2570_v14  ;;  %v678_v37 = vmax.f32 %v631_v30, 0.0 }
 0x1bf   : > { %v679_v36 = vmax.f32 %v633_v32, 0.0 }
 0x1c0   : > { %v680_v38 = vmax.f32 %v635_v34, 0.0 }
 0x1c1   : > { %v699_v39 = vpack.c.bf16 %v679_v36, %v677_v35 }
 0x1c2   : > { %v700_v40 = vpack.c.bf16 %v680_v38, %v678_v37  ;;  %v638_v41 = vpop.f32.mrb[24].mxu0 }
 0x1c3   : > { %v639_v42 = vadd.f32 %v638_v41, %v2566_v13  ;;  %v640_v43 = vpop.f32.mrb[25].mxu0 }
 0x1c4   : > { %v641_v44 = vadd.f32 %v640_v43, %v2570_v14  ;;  %v642_v45 = vpop.f32.mrb[26].mxu0  ;;  %912 = vmatprep.mubr.bf16.mxu1 %v700_v40 }
 0x1c5   : > { %v643_v46 = vadd.f32 %v642_v45, %v2566_v13  ;;  %v644_v47 = vpop.f32.mrb[27].mxu0  ;;  %913 = vmatmul.mubr.bf16.gmra.mrb[20].mxu1 %v699_v39  ;;  %v681_v49 = vmax.f32 %v639_v42, 0.0 }
 0x1c6   : > { %v645_v48 = vadd.f32 %v644_v47, %v2570_v14  ;;  %v682_v51 = vmax.f32 %v641_v44, 0.0 }
 0x1c7   : > { %v683_v50 = vmax.f32 %v643_v46, 0.0 }
 0x1c8   : > { %v684_v52 = vmax.f32 %v645_v48, 0.0 }
 0x1c9   : > { %v701_v53 = vpack.c.bf16 %v683_v50, %v681_v49 }
 0x1ca   : > { %v702_v54 = vpack.c.bf16 %v684_v52, %v682_v51  ;;  %v648_v55 = vpop.f32.mrb[28].mxu0 }
 0x1cb   : > { %v649_v56 = vadd.f32 %v648_v55, %v2566_v13  ;;  %v650_v57 = vpop.f32.mrb[29].mxu0 }
 0x1cc   : > { %v651_v58 = vadd.f32 %v650_v57, %v2570_v14  ;;  %v652_v59 = vpop.f32.mrb[30].mxu0  ;;  %920 = vmatprep.mubr.bf16.mxu1 %v702_v54 }
 0x1cd   : > { %v653_v60 = vadd.f32 %v652_v59, %v2566_v13  ;;  %v654_v61 = vpop.f32.mrb[31].mxu0  ;;  %921 = vmatmul.mubr.bf16.gmra.mrb[24].mxu1 %v701_v53  ;;  %v685_v63 = vmax.f32 %v649_v56, 0.0  ;;  %v1998_v13 = vld [vmem:[#allocation10 + $0x8] sm:$0xff]  }
 0x1ce   : > { %v655_v62 = vadd.f32 %v654_v61, %v2570_v14  ;;  %v686_v2 = vmax.f32 %v651_v58, 0.0  ;;  %v1999_v14 = vld [vmem:[#allocation10 + $0x50] sm:$0xff]   ;;  %1776 = vmatpush3.bf16.msra.mxu1 %v1998_v13 }
 0x1cf   : > { %v687_v1 = vmax.f32 %v653_v60, 0.0  ;;  %1777 = vmatprep.subr.bf16.mxu1 %v1999_v14 }
 0x1d0   : > { %v688_v3 = vmax.f32 %v655_v62, 0.0 }
 0x1d1   : > { %v703_v4 = vpack.c.bf16 %v687_v1, %v685_v63 }
 0x1d2   : > { %v704_v5 = vpack.c.bf16 %v688_v3, %v686_v2  ;;  %1778 = vmatpush3.bf16.msra.mxu1 %v2000_v16 }
 0x1d3   : > { %1779 = vmatprep.subr.bf16.mxu1 %v2001_v17 }
 0x1d4   : > { %928 = vmatprep.mubr.bf16.mxu1 %v704_v5 }
 0x1d5   : > { %929 = vmatmul.mubr.bf16.gmra.mrb[28].mxu1 %v703_v4 }
 0x1d6   : > { %1780 = vmatpush3.bf16.msra.mxu1 %v2002_v18 }
 0x1d7   : > { %1781 = vmatprep.subr.bf16.mxu1 %v2003_v19 }
 0x1da   : > { %1782 = vmatpush3.bf16.msra.mxu1 %v2004_v20 }
 0x1db   : > { %1783 = vmatprep.subr.bf16.mxu1 %v2005_v21 }
 0x1de   : > { %1784 = vmatpush3.bf16.msra.mxu1 %v2006_v22 }
 0x1df   : > { %1785 = vmatprep.subr.bf16.mxu1 %v2007_v23 }
 0x1e2   : > { %1786 = vmatpush3.bf16.msra.mxu1 %v2008_v24 }
 0x270   : > { %v1725_v25 = vpop.f32.mrb[0].mxu1 }
 0x271   : > { %v1726_v27 = vpop.f32.mrb[1].mxu1 }
 0x272   : > { %v1727_v28 = vadd.f32 %v1726_v27, %v1725_v25  ;;  %v1728_v29 = vpop.f32.mrb[2].mxu1 }
 0x273   : > { %v1729_v30 = vpop.f32.mrb[3].mxu1 }
 0x274   : > { %v875_v31 = vadd.f32 %v1727_v28, %v2607_v26  ;;  %v1730_v32 = vadd.f32 %v1729_v30, %v1728_v29 }
 0x276   : > { %v878_v33 = vadd.f32 %v1730_v32, %v2607_v26  ;;  %v937_v34 = vmax.f32 %v875_v31, 0.0 }
 0x278   : > { %v938_v35 = vmax.f32 %v878_v33, 0.0  ;;  %v1731_v36 = vpop.f32.mrb[4].mxu1 }
 0x279   : > { %v1732_v37 = vpop.f32.mrb[5].mxu1 }
 0x27a   : > { %v953_v38 = vpack.c.bf16 %v938_v35, %v937_v34  ;;  %v1733_v39 = vadd.f32 %v1732_v37, %v1731_v36  ;;  %v1734_v40 = vpop.f32.mrb[6].mxu1 }
 0x27b   : > { %v1735_v41 = vpop.f32.mrb[7].mxu1 }
 0x27c   : > { %v883_v42 = vadd.f32 %v1733_v39, %v2607_v26  ;;  %v1736_v43 = vadd.f32 %v1735_v41, %v1734_v40  ;;  %1102 = vmatmul.mubr.bf16.vlgmr.msra.gmra.mrb[32].mxu0 %v953_v38 }
 0x27d   : > { %1111 = vmatprep.mubr.bf16.mxu0 %v2238_v0 }
 0x27e   : > { %v886_v44 = vadd.f32 %v1736_v43, %v2607_v26  ;;  %v939_v45 = vmax.f32 %v883_v42, 0.0 }
 0x280   : > { %v940_v46 = vmax.f32 %v886_v44, 0.0  ;;  %v1737_v47 = vpop.f32.mrb[8].mxu1 }
 0x281   : > { %v1738_v48 = vpop.f32.mrb[9].mxu1 }
 0x282   : > { %v1739_v49 = vadd.f32 %v1738_v48, %v1737_v47  ;;  %v1740_v50 = vpop.f32.mrb[10].mxu1  ;;  %v954_v51 = vpack.c.bf16 %v940_v46, %v939_v45 }
 0x283   : > { %v1741_v52 = vpop.f32.mrb[11].mxu1 }
 0x284   : > { %v891_v53 = vadd.f32 %v1739_v49, %v2607_v26  ;;  %v1742_v54 = vadd.f32 %v1741_v52, %v1740_v50  ;;  %1112 = vmatmul.mubr.bf16.gmra.mrb[36].mxu0 %v954_v51 }
 0x285   : > { %1121 = vmatprep.mubr.bf16.mxu0 %v2238_v0 }
 0x286   : > { %v894_v55 = vadd.f32 %v1742_v54, %v2607_v26  ;;  %v941_v56 = vmax.f32 %v891_v53, 0.0 }
 0x288   : > { %v942_v57 = vmax.f32 %v894_v55, 0.0  ;;  %v1743_v58 = vpop.f32.mrb[12].mxu1  ;;  %v2009_v55 = vld [vmem:[#allocation10 + $0x78] sm:$0xff]  }
 0x289   : > { %v1744_v59 = vpop.f32.mrb[13].mxu1  ;;  %1787 = vmatprep.subr.bf16.mxu1 %v2009_v55 }
 0x28a   : > { %v1745_v60 = vadd.f32 %v1744_v59, %v1743_v58  ;;  %v1746_v61 = vpop.f32.mrb[14].mxu1  ;;  %v955_v62 = vpack.c.bf16 %v942_v57, %v941_v56  ;;  %v2010_v56 = vld [vmem:[#allocation10 + $0x38] sm:$0xff]   ;;  %v977_v57 = vld [vmem:[%s2773_s6] sm:$0x3] }
 0x28b   : > { %v1747_v63 = vpop.f32.mrb[15].mxu1  ;;  %1788 = vmatpush3.bf16.msra.mxu1 %v2010_v56  ;;  %v2637_v58 = vrot.slane %v977_v57, %v456_v10 }
 0x28c   : > { %v899_v1 = vadd.f32 %v1745_v60, %v2607_v26  ;;  %v1748_v2 = vadd.f32 %v1747_v63, %v1746_v61  ;;  %1122 = vmatmul.mubr.bf16.gmra.mrb[40].mxu0 %v955_v62 }
 0x28d   : > { %1131 = vmatprep.mubr.bf16.mxu0 %v2238_v0 }
 0x28e   : > { %v902_v3 = vadd.f32 %v1748_v2, %v2607_v26  ;;  %v943_v4 = vmax.f32 %v899_v1, 0.0 }
 0x290   : > { %v944_v5 = vmax.f32 %v902_v3, 0.0  ;;  %v1749_v6 = vpop.f32.mrb[16].mxu1 }
 0x291   : > { %v1750_v7 = vpop.f32.mrb[17].mxu1 }
 0x292   : > { %v1751_v8 = vadd.f32 %v1750_v7, %v1749_v6  ;;  %v1752_v11 = vpop.f32.mrb[18].mxu1  ;;  %v956_v15 = vpack.c.bf16 %v944_v5, %v943_v4 }
 0x293   : > { %v1753_v13 = vpop.f32.mrb[19].mxu1 }
 0x294   : > { %v907_v14 = vadd.f32 %v1751_v8, %v2607_v26  ;;  %v1754_v16 = vadd.f32 %v1753_v13, %v1752_v11  ;;  %1132 = vmatmul.mubr.bf16.gmra.mrb[44].mxu0 %v956_v15 }
 0x295   : > { %1141 = vmatprep.mubr.bf16.mxu0 %v2238_v0 }
 0x296   : > { %v910_v17 = vadd.f32 %v1754_v16, %v2607_v26  ;;  %v945_v18 = vmax.f32 %v907_v14, 0.0 }
 0x298   : > { %v946_v19 = vmax.f32 %v910_v17, 0.0  ;;  %v1755_v20 = vpop.f32.mrb[20].mxu1 }
 0x299   : > { %v1756_v21 = vpop.f32.mrb[21].mxu1 }
 0x29a   : > { %v1757_v22 = vadd.f32 %v1756_v21, %v1755_v20  ;;  %v1758_v23 = vpop.f32.mrb[22].mxu1  ;;  %v957_v24 = vpack.c.bf16 %v946_v19, %v945_v18 }
 0x29b   : > { %v1759_v25 = vpop.f32.mrb[23].mxu1 }
 0x29c   : > { %v915_v27 = vadd.f32 %v1757_v22, %v2607_v26  ;;  %v1760_v28 = vadd.f32 %v1759_v25, %v1758_v23  ;;  %1142 = vmatmul.mubr.bf16.gmra.mrb[48].mxu0 %v957_v24 }
 0x29d   : > { %1151 = vmatprep.mubr.bf16.mxu0 %v2238_v0 }
 0x29e   : > { %v918_v29 = vadd.f32 %v1760_v28, %v2607_v26  ;;  %v947_v30 = vmax.f32 %v915_v27, 0.0 }
 0x2a0   : > { %v948_v31 = vmax.f32 %v918_v29, 0.0  ;;  %v1761_v32 = vpop.f32.mrb[24].mxu1 }
 0x2a1   : > { %v1762_v33 = vpop.f32.mrb[25].mxu1 }
 0x2a2   : > { %v1763_v34 = vadd.f32 %v1762_v33, %v1761_v32  ;;  %v1764_v35 = vpop.f32.mrb[26].mxu1  ;;  %v958_v36 = vpack.c.bf16 %v948_v31, %v947_v30 }
 0x2a3   : > { %v1765_v37 = vpop.f32.mrb[27].mxu1 }
 0x2a4   : > { %v923_v38 = vadd.f32 %v1763_v34, %v2607_v26  ;;  %v1766_v39 = vadd.f32 %v1765_v37, %v1764_v35  ;;  %1152 = vmatmul.mubr.bf16.gmra.mrb[52].mxu0 %v958_v36 }
 0x2a5   : > { %1161 = vmatprep.mubr.bf16.mxu0 %v2238_v0 }
 0x2a6   : > { %v926_v40 = vadd.f32 %v1766_v39, %v2607_v26  ;;  %v949_v41 = vmax.f32 %v923_v38, 0.0 }
 0x2a8   : > { %v950_v42 = vmax.f32 %v926_v40, 0.0  ;;  %v1767_v43 = vpop.f32.mrb[28].mxu1 }
 0x2a9   : > { %v1768_v44 = vpop.f32.mrb[29].mxu1 }
 0x2aa   : > { %v1769_v45 = vadd.f32 %v1768_v44, %v1767_v43  ;;  %v1770_v46 = vpop.f32.mrb[30].mxu1  ;;  %v959_v47 = vpack.c.bf16 %v950_v42, %v949_v41 }
 0x2ab   : > { %v1771_v48 = vpop.f32.mrb[31].mxu1 }
 0x2ac   : > { %v931_v49 = vadd.f32 %v1769_v45, %v2607_v26  ;;  %v1772_v50 = vadd.f32 %v1771_v48, %v1770_v46  ;;  %1162 = vmatmul.mubr.bf16.gmra.mrb[56].mxu0 %v959_v47 }
 0x2ad   : > { %1171 = vmatprep.mubr.bf16.mxu0 %v2238_v0  ;;  %v2641_v0 = vrot.slane %v977_v57, %v460_v12 }
 0x2ae   : > { %v934_v51 = vadd.f32 %v1772_v50, %v2607_v26  ;;  %v951_v52 = vmax.f32 %v931_v49, 0.0 }
 0x2b0   : > { %v952_v53 = vmax.f32 %v934_v51, 0.0 }
 0x2b2   : > { %v960_v54 = vpack.c.bf16 %v952_v53, %v951_v52 }
 0x2b4   : > { %1172 = vmatmul.mubr.bf16.gmra.mrb[60].mxu0 %v960_v54 }
 0x34f   : > { %v1103_v26 = vpop.f32.mrb[32].mxu0 }
 0x350   : > { %v1104_v59 = vadd.f32 %v1103_v26, %v2637_v58  ;;  %v1105_v60 = vpop.f32.mrb[33].mxu0 }
 0x351   : > { %v1106_v61 = vadd.f32 %v1105_v60, %v2641_v0  ;;  %v1107_v62 = vpop.f32.mrb[34].mxu0 }
 0x352   : > { %v1108_v63 = vadd.f32 %v1107_v62, %v2637_v58  ;;  %v1109_v1 = vpop.f32.mrb[35].mxu0  ;;  %v1182_v3 = vmax.f32 %v1104_v59, 0.0 }
 0x353   : > { %v1110_v2 = vadd.f32 %v1109_v1, %v2641_v0  ;;  %v1183_v10 = vmax.f32 %v1106_v61, 0.0 }
 0x354   : > { %v1184_v4 = vmax.f32 %v1108_v63, 0.0 }
 0x355   : > { %v1185_v5 = vmax.f32 %v1110_v2, 0.0 }
 0x356   : > { %v1214_v6 = vpack.c.bf16 %v1184_v4, %v1182_v3 }
 0x357   : > { %v1215_v9 = vpack.c.bf16 %v1185_v5, %v1183_v10  ;;  %v1113_v12 = vpop.f32.mrb[36].mxu0 }
 0x358   : > { %v1114_v7 = vadd.f32 %v1113_v12, %v2637_v58  ;;  %v1115_v8 = vpop.f32.mrb[37].mxu0 }
 0x359   : > { %v1116_v11 = vadd.f32 %v1115_v8, %v2641_v0  ;;  %v1117_v15 = vpop.f32.mrb[38].mxu0  ;;  %1397 = vmatprep.mubr.bf16.mxu1 %v1215_v9 }
 0x35a   : > { %v1118_v13 = vadd.f32 %v1117_v15, %v2637_v58  ;;  %v1119_v14 = vpop.f32.mrb[39].mxu0  ;;  %1398 = vmatmul.mubr.bf16.vlgmr.msra.gmra.mrb[32].mxu1 %v1214_v6  ;;  %v1186_v17 = vmax.f32 %v1114_v7, 0.0 }
 0x35b   : > { %v1120_v16 = vadd.f32 %v1119_v14, %v2641_v0  ;;  %v1187_v19 = vmax.f32 %v1116_v11, 0.0 }
 0x35c   : > { %v1188_v18 = vmax.f32 %v1118_v13, 0.0 }
 0x35d   : > { %v1189_v20 = vmax.f32 %v1120_v16, 0.0 }
 0x35e   : > { %v1216_v21 = vpack.c.bf16 %v1188_v18, %v1186_v17 }
 0x35f   : > { %v1217_v22 = vpack.c.bf16 %v1189_v20, %v1187_v19  ;;  %v1123_v23 = vpop.f32.mrb[40].mxu0 }
 0x360   : > { %v1124_v24 = vadd.f32 %v1123_v23, %v2637_v58  ;;  %v1125_v25 = vpop.f32.mrb[41].mxu0 }
 0x361   : > { %v1126_v27 = vadd.f32 %v1125_v25, %v2641_v0  ;;  %v1127_v28 = vpop.f32.mrb[42].mxu0  ;;  %1405 = vmatprep.mubr.bf16.mxu1 %v1217_v22 }
 0x362   : > { %v1128_v29 = vadd.f32 %v1127_v28, %v2637_v58  ;;  %v1129_v30 = vpop.f32.mrb[43].mxu0  ;;  %1406 = vmatmul.mubr.bf16.gmra.mrb[36].mxu1 %v1216_v21  ;;  %v1190_v32 = vmax.f32 %v1124_v24, 0.0 }
 0x363   : > { %v1130_v31 = vadd.f32 %v1129_v30, %v2641_v0  ;;  %v1191_v34 = vmax.f32 %v1126_v27, 0.0 }
 0x364   : > { %v1192_v33 = vmax.f32 %v1128_v29, 0.0 }
 0x365   : > { %v1193_v35 = vmax.f32 %v1130_v31, 0.0 }
 0x366   : > { %v1218_v36 = vpack.c.bf16 %v1192_v33, %v1190_v32 }
 0x367   : > { %v1219_v37 = vpack.c.bf16 %v1193_v35, %v1191_v34  ;;  %v1133_v38 = vpop.f32.mrb[44].mxu0 }
 0x368   : > { %v1134_v39 = vadd.f32 %v1133_v38, %v2637_v58  ;;  %v1135_v40 = vpop.f32.mrb[45].mxu0 }
 0x369   : > { %v1136_v41 = vadd.f32 %v1135_v40, %v2641_v0  ;;  %v1137_v42 = vpop.f32.mrb[46].mxu0  ;;  %1413 = vmatprep.mubr.bf16.mxu1 %v1219_v37 }
 0x36a   : > { %v1138_v43 = vadd.f32 %v1137_v42, %v2637_v58  ;;  %v1139_v44 = vpop.f32.mrb[47].mxu0  ;;  %1414 = vmatmul.mubr.bf16.gmra.mrb[40].mxu1 %v1218_v36  ;;  %v1194_v46 = vmax.f32 %v1134_v39, 0.0 }
 0x36b   : > { %v1140_v45 = vadd.f32 %v1139_v44, %v2641_v0  ;;  %v1195_v48 = vmax.f32 %v1136_v41, 0.0 }
 0x36c   : > { %v1196_v47 = vmax.f32 %v1138_v43, 0.0 }
 0x36d   : > { %v1197_v49 = vmax.f32 %v1140_v45, 0.0 }
 0x36e   : > { %v1220_v50 = vpack.c.bf16 %v1196_v47, %v1194_v46  ;;  %v2678_v47 = vld [vmem:[%s2775_s8] ss:$0 sm:$0xff] }
 0x36f   : > { %v1221_v51 = vpack.c.bf16 %v1197_v49, %v1195_v48  ;;  %v1143_v52 = vpop.f32.mrb[48].mxu0 }
 0x370   : > { %v1144_v53 = vadd.f32 %v1143_v52, %v2637_v58  ;;  %v1145_v54 = vpop.f32.mrb[49].mxu0 }
 0x371   : > { %v1146_v55 = vadd.f32 %v1145_v54, %v2641_v0  ;;  %v1147_v56 = vpop.f32.mrb[50].mxu0  ;;  %1421 = vmatprep.mubr.bf16.mxu1 %v1221_v51 }
 0x372   : > { %v1148_v57 = vadd.f32 %v1147_v56, %v2637_v58  ;;  %v1149_v26 = vpop.f32.mrb[51].mxu0  ;;  %1422 = vmatmul.mubr.bf16.gmra.mrb[44].mxu1 %v1220_v50  ;;  %v1198_v60 = vmax.f32 %v1144_v53, 0.0 }
 0x373   : > { %v1150_v59 = vadd.f32 %v1149_v26, %v2641_v0  ;;  %v1199_v62 = vmax.f32 %v1146_v55, 0.0 }
 0x374   : > { %v1200_v61 = vmax.f32 %v1148_v57, 0.0 }
 0x375   : > { %v1201_v63 = vmax.f32 %v1150_v59, 0.0 }
 0x376   : > { %v1222_v1 = vpack.c.bf16 %v1200_v61, %v1198_v60 }
 0x377   : > { %v1223_v2 = vpack.c.bf16 %v1201_v63, %v1199_v62  ;;  %v1153_v3 = vpop.f32.mrb[52].mxu0 }
 0x378   : > { %v1154_v4 = vadd.f32 %v1153_v3, %v2637_v58  ;;  %v1155_v10 = vpop.f32.mrb[53].mxu0 }
 0x379   : > { %v1156_v5 = vadd.f32 %v1155_v10, %v2641_v0  ;;  %v1157_v6 = vpop.f32.mrb[54].mxu0  ;;  %1429 = vmatprep.mubr.bf16.mxu1 %v1223_v2 }
 0x37a   : > { %v1158_v9 = vadd.f32 %v1157_v6, %v2637_v58  ;;  %v1159_v12 = vpop.f32.mrb[55].mxu0  ;;  %1430 = vmatmul.mubr.bf16.gmra.mrb[48].mxu1 %v1222_v1  ;;  %v1202_v8 = vmax.f32 %v1154_v4, 0.0 }
 0x37b   : > { %v1160_v7 = vadd.f32 %v1159_v12, %v2641_v0  ;;  %v1203_v15 = vmax.f32 %v1156_v5, 0.0 }
 0x37c   : > { %v1204_v11 = vmax.f32 %v1158_v9, 0.0 }
 0x37d   : > { %v1205_v13 = vmax.f32 %v1160_v7, 0.0 }
 0x37e   : > { %v1224_v14 = vpack.c.bf16 %v1204_v11, %v1202_v8 }
 0x37f   : > { %v1225_v16 = vpack.c.bf16 %v1205_v13, %v1203_v15  ;;  %v1163_v17 = vpop.f32.mrb[56].mxu0 }
 0x380   : > { %v1164_v18 = vadd.f32 %v1163_v17, %v2637_v58  ;;  %v1165_v19 = vpop.f32.mrb[57].mxu0 }
 0x381   : > { %v1166_v20 = vadd.f32 %v1165_v19, %v2641_v0  ;;  %v1167_v21 = vpop.f32.mrb[58].mxu0  ;;  %1437 = vmatprep.mubr.bf16.mxu1 %v1225_v16 }
 0x382   : > { %v1168_v22 = vadd.f32 %v1167_v21, %v2637_v58  ;;  %v1169_v23 = vpop.f32.mrb[59].mxu0  ;;  %1438 = vmatmul.mubr.bf16.gmra.mrb[52].mxu1 %v1224_v14  ;;  %v1206_v25 = vmax.f32 %v1164_v18, 0.0 }
 0x383   : > { %v1170_v24 = vadd.f32 %v1169_v23, %v2641_v0  ;;  %v1207_v28 = vmax.f32 %v1166_v20, 0.0 }
 0x384   : > { %v1208_v27 = vmax.f32 %v1168_v22, 0.0 }
 0x385   : > { %v1209_v29 = vmax.f32 %v1170_v24, 0.0 }
 0x386   : > { %v1226_v30 = vpack.c.bf16 %v1208_v27, %v1206_v25 }
 0x387   : > { %v1227_v31 = vpack.c.bf16 %v1209_v29, %v1207_v28  ;;  %v1173_v32 = vpop.f32.mrb[60].mxu0 }
 0x388   : > { %v1174_v33 = vadd.f32 %v1173_v32, %v2637_v58  ;;  %v1175_v34 = vpop.f32.mrb[61].mxu0 }
 0x389   : > { %v1176_v35 = vadd.f32 %v1175_v34, %v2641_v0  ;;  %v1177_v36 = vpop.f32.mrb[62].mxu0  ;;  %1445 = vmatprep.mubr.bf16.mxu1 %v1227_v31 }
 0x38a   : > { %v1178_v37 = vadd.f32 %v1177_v36, %v2637_v58  ;;  %v1179_v38 = vpop.f32.mrb[63].mxu0  ;;  %1446 = vmatmul.mubr.bf16.gmra.mrb[56].mxu1 %v1226_v30  ;;  %v1210_v40 = vmax.f32 %v1174_v33, 0.0 }
 0x38b   : > { %v1180_v39 = vadd.f32 %v1179_v38, %v2641_v0  ;;  %v1211_v42 = vmax.f32 %v1176_v35, 0.0 }
 0x38c   : > { %v1212_v41 = vmax.f32 %v1178_v37, 0.0 }
 0x38d   : > { %v1213_v43 = vmax.f32 %v1180_v39, 0.0 }
 0x38e   : > { %v1228_v44 = vpack.c.bf16 %v1212_v41, %v1210_v40 }
 0x38f   : > { %v1229_v45 = vpack.c.bf16 %v1213_v43, %v1211_v42 }
 0x391   : > { %1453 = vmatprep.mubr.bf16.mxu1 %v1229_v45 }
 0x392   : > { %1454 = vmatmul.mubr.bf16.gmra.mrb[60].mxu1 %v1228_v44 }
 0x42d   : > { %v1789_v46 = vpop.f32.mrb[32].mxu1 }
 0x42e   : > { %v1790_v58 = vpop.f32.mrb[33].mxu1 }
 0x42f   : > { %v1791_v48 = vadd.f32 %v1790_v58, %v1789_v46  ;;  %v1792_v49 = vpop.f32.mrb[34].mxu1 }
 0x430   : > { %v1793_v50 = vpop.f32.mrb[35].mxu1 }
 0x431   : > { %v1400_v0 = vadd.f32 %v1791_v48, %v2678_v47  ;;  %v1794_v51 = vadd.f32 %v1793_v50, %v1792_v49 }
 0x433   : > { %v1462_v52 = vmax.f32 %v1400_v0, 0.0  ;;  %v1403_v53 = vadd.f32 %v1794_v51, %v2678_v47 }
 0x435   : > { %1478 = vst [vmem:[%s2684_s25] sm:$0xff] %v1462_v52  ;;  %v1463_v54 = vmax.f32 %v1403_v53, 0.0  ;;  %v1795_v55 = vpop.f32.mrb[36].mxu1 }
 0x436   : > { %v1796_v56 = vpop.f32.mrb[37].mxu1 }
 0x437   : > { %1479 = vst [vmem:[%s2684_s25 + $0x8] sm:$0xff] %v1463_v54  ;;  %v1797_v57 = vadd.f32 %v1796_v56, %v1795_v55  ;;  %v1798_v26 = vpop.f32.mrb[38].mxu1 }
 0x438   : > { %v1799_v59 = vpop.f32.mrb[39].mxu1 }
 0x439   : > { %v1408_v60 = vadd.f32 %v1797_v57, %v2678_v47  ;;  %v1800_v61 = vadd.f32 %v1799_v59, %v1798_v26 }
 0x43b   : > { %v1464_v62 = vmax.f32 %v1408_v60, 0.0  ;;  %v1411_v63 = vadd.f32 %v1800_v61, %v2678_v47 }
 0x43d   : > { %1480 = vst [vmem:[%s2684_s25 + $0x10] sm:$0xff] %v1464_v62  ;;  %v1465_v1 = vmax.f32 %v1411_v63, 0.0  ;;  %v1801_v2 = vpop.f32.mrb[40].mxu1 }
 0x43e   : > { %v1802_v3 = vpop.f32.mrb[41].mxu1 }
 0x43f   : > { %1481 = vst [vmem:[%s2684_s25 + $0x18] sm:$0xff] %v1465_v1  ;;  %v1803_v4 = vadd.f32 %v1802_v3, %v1801_v2  ;;  %v1804_v10 = vpop.f32.mrb[42].mxu1 }
 0x440   : > { %v1805_v5 = vpop.f32.mrb[43].mxu1 }
 0x441   : > { %v1416_v6 = vadd.f32 %v1803_v4, %v2678_v47  ;;  %v1806_v9 = vadd.f32 %v1805_v5, %v1804_v10 }
 0x443   : > { %v1466_v12 = vmax.f32 %v1416_v6, 0.0  ;;  %v1419_v7 = vadd.f32 %v1806_v9, %v2678_v47 }
 0x445   : > { %1482 = vst [vmem:[%s2684_s25 + $0x20] sm:$0xff] %v1466_v12  ;;  %v1467_v8 = vmax.f32 %v1419_v7, 0.0  ;;  %v1807_v11 = vpop.f32.mrb[44].mxu1 }
 0x446   : > { %v1808_v15 = vpop.f32.mrb[45].mxu1 }
 0x447   : > { %1483 = vst [vmem:[%s2684_s25 + $0x28] sm:$0xff] %v1467_v8  ;;  %v1809_v13 = vadd.f32 %v1808_v15, %v1807_v11  ;;  %v1810_v14 = vpop.f32.mrb[46].mxu1 }
 0x448   : > { %v1811_v16 = vpop.f32.mrb[47].mxu1 }
 0x449   : > { %v1424_v17 = vadd.f32 %v1809_v13, %v2678_v47  ;;  %v1812_v18 = vadd.f32 %v1811_v16, %v1810_v14 }
 0x44b   : > { %v1468_v19 = vmax.f32 %v1424_v17, 0.0  ;;  %v1427_v20 = vadd.f32 %v1812_v18, %v2678_v47 }
 0x44d   : > { %1484 = vst [vmem:[%s2684_s25 + $0x30] sm:$0xff] %v1468_v19  ;;  %v1469_v21 = vmax.f32 %v1427_v20, 0.0  ;;  %v1813_v22 = vpop.f32.mrb[48].mxu1 }
 0x44e   : > { %v1814_v23 = vpop.f32.mrb[49].mxu1 }
 0x44f   : > { %1485 = vst [vmem:[%s2684_s25 + $0x38] sm:$0xff] %v1469_v21  ;;  %v1815_v24 = vadd.f32 %v1814_v23, %v1813_v22  ;;  %v1816_v25 = vpop.f32.mrb[50].mxu1 }
 0x450   : > { %v1817_v27 = vpop.f32.mrb[51].mxu1 }
 0x451   : > { %v1432_v28 = vadd.f32 %v1815_v24, %v2678_v47  ;;  %v1818_v29 = vadd.f32 %v1817_v27, %v1816_v25 }
 0x453   : > { %v1470_v30 = vmax.f32 %v1432_v28, 0.0  ;;  %v1435_v31 = vadd.f32 %v1818_v29, %v2678_v47 }
 0x455   : > { %1486 = vst [vmem:[%s2684_s25 + $0x40] sm:$0xff] %v1470_v30  ;;  %v1471_v32 = vmax.f32 %v1435_v31, 0.0  ;;  %v1819_v33 = vpop.f32.mrb[52].mxu1 }
 0x456   : > { %v1820_v34 = vpop.f32.mrb[53].mxu1 }
 0x457   : > { %1487 = vst [vmem:[%s2684_s25 + $0x48] sm:$0xff] %v1471_v32  ;;  %v1821_v35 = vadd.f32 %v1820_v34, %v1819_v33  ;;  %v1822_v36 = vpop.f32.mrb[54].mxu1 }
 0x458   : > { %v1823_v37 = vpop.f32.mrb[55].mxu1 }
 0x459   : > { %v1440_v38 = vadd.f32 %v1821_v35, %v2678_v47  ;;  %v1824_v39 = vadd.f32 %v1823_v37, %v1822_v36 }
 0x45b   : > { %v1472_v40 = vmax.f32 %v1440_v38, 0.0  ;;  %v1443_v41 = vadd.f32 %v1824_v39, %v2678_v47 }
 0x45d   : > { %1488 = vst [vmem:[%s2684_s25 + $0x50] sm:$0xff] %v1472_v40  ;;  %v1473_v42 = vmax.f32 %v1443_v41, 0.0  ;;  %v1825_v43 = vpop.f32.mrb[56].mxu1 }
 0x45e   : > { %v1826_v44 = vpop.f32.mrb[57].mxu1 }
 0x45f   : > { %1489 = vst [vmem:[%s2684_s25 + $0x58] sm:$0xff] %v1473_v42  ;;  %v1827_v45 = vadd.f32 %v1826_v44, %v1825_v43  ;;  %v1828_v46 = vpop.f32.mrb[58].mxu1 }
 0x460   : > { %v1829_v58 = vpop.f32.mrb[59].mxu1 }
 0x461   : > { %v1448_v48 = vadd.f32 %v1827_v45, %v2678_v47  ;;  %v1830_v49 = vadd.f32 %v1829_v58, %v1828_v46 }
 0x463   : > { %v1474_v50 = vmax.f32 %v1448_v48, 0.0  ;;  %v1451_v0 = vadd.f32 %v1830_v49, %v2678_v47 }
 0x465   : > { %1490 = vst [vmem:[%s2684_s25 + $0x60] sm:$0xff] %v1474_v50  ;;  %v1475_v51 = vmax.f32 %v1451_v0, 0.0  ;;  %v1831_v52 = vpop.f32.mrb[60].mxu1 }
 0x466   : > { %v1832_v53 = vpop.f32.mrb[61].mxu1 }
 0x467   : > { %1491 = vst [vmem:[%s2684_s25 + $0x68] sm:$0xff] %v1475_v51  ;;  %v1833_v54 = vadd.f32 %v1832_v53, %v1831_v52  ;;  %v1834_v55 = vpop.f32.mrb[62].mxu1 }
 0x468   : > { %v1835_v56 = vpop.f32.mrb[63].mxu1 }
 0x469   : > { %v1456_v57 = vadd.f32 %v1833_v54, %v2678_v47  ;;  %v1836_v26 = vadd.f32 %v1835_v56, %v1834_v55 }
 0x46b   : > { %v1476_v59 = vmax.f32 %v1456_v57, 0.0  ;;  %v1459_v60 = vadd.f32 %v1836_v26, %v2678_v47 }
 0x46d   : > { %1492 = vst [vmem:[%s2684_s25 + $0x70] sm:$0xff] %v1476_v59  ;;  %v1477_v61 = vmax.f32 %v1459_v60, 0.0 }
 0x46f   : > { %1493 = vst [vmem:[%s2684_s25 + $0x78] sm:$0xff] %v1477_v61 }
 0x470   : > { %2166 = shalt.err (!%p2163_p13)
}
 0x471   : > { %s2167_s29 = scalar_lea.hbm %s2719_s15, 2048  ;;  %s2171_s25 = scalar_lea.hbm %s2804_s24, 4096 }
 0x472   : > { %p2168_p9 = scmp.ne.s32.totalorder %s2719_s15, %s2167_s29  ;;  %p2172_p4 = scmp.lt.u32.totalorder %s2719_s15, %s2804_s24 }
 0x473   : > { %p2173_p8 = scmp.lt.u32.totalorder %s2171_s25, %s2167_s29  ;;  %p2175_p3 = scmp.lt.u32.totalorder %s2167_s29, %s2719_s15 }
 0x474   : > { %p2169_p0 = pnand %p2168_p9, %p2457_p10 }
 0x475   : > { %p2174_p6 = por %p2173_p8, %p2172_p4 }
 0x476   : > { %p2170_p11 = pneg %p2169_p0 }
 0x477   : > { %p2176_p5 = por %p2175_p3, %p2174_p6 }
 0x479   : > { %p2177_p7 = pnand %p2176_p5, %p2170_p11 }
 0x47b   : > { %2180 = shalt.err (!%p2177_p7)
}
 0x47c   : > { %s2240_s9 = smov 128   ;;  %s2241_s21 = smov 8  }
 0x47d   : > { %1855 = dma.vmem_to_hbm [thread:$0]  (%p2457_p10), %s2721_s20, 2048, %s2719_s15, %s1495_s17, %s2240_s9, %s2240_s9, %s2241_s21  }
 0x47e PF: > { %s2805_s13 = sld [smem:[#allocation16_spill]]  ;;  %s2806_s19 = sld [smem:[#allocation17_spill]] }
 0x47f   : > { %p2808_p1 = scmp.ge.s32.totalorder %s2227_s12, 2 }
 0x484   : > { %s1523_s30 = sand.u32 1, %s2805_s13   ;;  %p2807_p12 = scmp.ne.s32.totalorder %s2806_s19, 0 }
 0x485   : > { %s1524_s29 = scalar_lea.sflag [#allocation4], %s1523_s30 }
 0x486   : > { %p1875_p2 = pnand %p2808_p1, %p2807_p12 }
 0x488   : > { %2210 = dma.done.wait (!%p1875_p2), %s1524_s29, 2048  }
 0x489   : > { %2212 = vsyncadd (!%p1875_p2), %s1524_s29, 4294965248  ;;  %p24_p13 = scmp.ge.s32.totalorder %s2447_s14, 4   ;;  %s2809_s30 = smov %s2219_s10 }
 0x48a   : > { %s2810_s10 = smov %s2223_s11  ;;  %s2811_s11 = smov %s2463_s27 }
 0x48b   : > { %s2812_s12 = smov %s2447_s14  ;;  %26 = sbr.rel (!%p24_p13) target bundleno = 9 (0x9), region = 117 }
 0x492   :  { %1529 = vsyncpa [#allocation3], 1 }
 0x493   :  { %1531 = vsyncpa [#allocation3 + $0x1], 1 }
 0x494   :  { %1532 = vsyncpa [#allocation6], 1 }
 0x495   :  { %1533 = vsyncpa [#allocation9], 1 }
 0x496   :  { %1534 = vsyncpa [#allocation4], 1 }
 0x497   :  { %1536 = vsyncpa [#allocation4 + $0x1], 1 }

</bundles_post_ra>
